<compile_context>
chip_gen: v7x
topology: tpu7x:2x2x1
jax: 0.10.0
libtpu: 0.0.40
codegen_flags: <defaults>
</compile_context>

<pallas_src>
import numpy as np
import jax
import jax.numpy as jnp
from jax import lax
from jax.experimental import pallas as pl
from jax.experimental.pallas import tpu as pltpu

# ----- sizes (small, consistent with the module: dim % n == 0) -----
N = 2            # batch
TQ = 8           # decoder sequence length
TK = 8           # encoder sequence length
D = 32           # model dim
NHEADS = 4       # attention heads
HDIM = D // NHEADS
DFF = 64         # FFN hidden dim
EPS = 1e-5       # nn.LayerNorm default eps

# TODO(synk): dropout (dropout_attn / dropout_posffn) is implemented as identity (eval mode).


# ------------------------------------ the fused kernel ------------------------------------
def decoder_layer_kernel(dec_in_ref, enc_out_ref, dec_bias_ref, denc_bias_ref,
                         ln_g_ref, ln_b_ref,
                         sa_wqkv_ref, sa_bqkv_ref, sa_wo_ref, sa_bo_ref,
                         ca_wq_ref, ca_bq_ref, ca_wkv_ref, ca_bkv_ref,
                         ca_wo_ref, ca_bo_ref,
                         w1_ref, b1_ref, w2_ref, b2_ref,
                         out_ref):
    x = dec_in_ref[...].astype(jnp.float32).reshape(N * TQ, D)     # (N*TQ, D)
    enc = enc_out_ref[...].astype(jnp.float32).reshape(N * TK, D)  # (N*TK, D)

    def layernorm(h, idx):
        mu = jnp.mean(h, axis=-1, keepdims=True)
        var = jnp.mean((h - mu) ** 2, axis=-1, keepdims=True)
        return (h - mu) * lax.rsqrt(var + EPS) * ln_g_ref[idx] + ln_b_ref[idx]

    def attend(q2, k2, v2, t_k, bias2, wo, bo):
        # q2: (N*TQ, D) with head-major columns (scale already folded into q2)
        # k2, v2: (N*t_k, D) head-major columns; bias2: (N*TQ, t_k) additive (0 / -1e4)
        outs = []
        for h in range(NHEADS):                      # 4 iterations, unrolled
            c0 = h * HDIM
            q_h = q2[:, c0:c0 + HDIM].reshape(N, TQ, HDIM)
            k_h = k2[:, c0:c0 + HDIM].reshape(N, t_k, HDIM)
            v_h = v2[:, c0:c0 + HDIM].reshape(N, t_k, HDIM)
            s = jnp.einsum('nqd,nkd->nqk', q_h, k_h,
                           preferred_element_type=jnp.float32).reshape(N * TQ, t_k)
            s = s + bias2
            m = jnp.max(s, axis=-1, keepdims=True)
            e = jnp.exp(s - m)
            p = e / jnp.sum(e, axis=-1, keepdims=True)          # exact divide (correctness)
            o_h = jnp.einsum('nqk,nkd->nqd', p.reshape(N, TQ, t_k), v_h,
                             preferred_element_type=jnp.float32)
            outs.append(o_h.reshape(N * TQ, HDIM))
        o2 = jnp.concatenate(outs, axis=-1)                      # (N*TQ, D), heads concatenated
        return jnp.dot(o2, wo, preferred_element_type=jnp.float32) + bo

    # ----- dec_in = norm1(dec_in); dec_out = dec_in + self_attn(dec_in, dec_in, dec_in, mask)
    x = layernorm(x, 0)
    qkv = jnp.dot(x, sa_wqkv_ref[...], preferred_element_type=jnp.float32) + sa_bqkv_ref[...]
    x = x + attend(qkv[:, 0:D], qkv[:, D:2 * D], qkv[:, 2 * D:3 * D], TQ,
                   dec_bias_ref[...].reshape(N * TQ, TQ),
                   sa_wo_ref[...], sa_bo_ref[...])

    # ----- dec_out = norm2(dec_out); dec_out += cross_attn(dec_out, enc_out, enc_out, mask)
    x = layernorm(x, 1)
    q2 = jnp.dot(x, ca_wq_ref[...], preferred_element_type=jnp.float32) + ca_bq_ref[...]
    kv = jnp.dot(enc, ca_wkv_ref[...], preferred_element_type=jnp.float32) + ca_bkv_ref[...]
    x = x + attend(q2, kv[:, 0:D], kv[:, D:2 * D], TK,
                   denc_bias_ref[...].reshape(N * TQ, TK),
                   ca_wo_ref[...], ca_bo_ref[...])

    # ----- dec_out = norm3(dec_out); dec_out += poswise_ffn(dec_out)   (Conv1d k=1 == Linear)
    x = layernorm(x, 2)
    hft = jnp.maximum(jnp.dot(x, w1_ref[...], preferred_element_type=jnp.float32)
                      + b1_ref[...], 0.0)
    x = x + (jnp.dot(hft, w2_ref[...], preferred_element_type=jnp.float32) + b2_ref[...])

    out_ref[...] = x.reshape(N, TQ, D).astype(out_ref.dtype)


# --------------------------- one-time wrapper-side weight packing ---------------------------
def pack_params(params):
    """Called ONCE at setup (cached); not part of the per-call path."""
    ln_g, ln_b, sa_w, sa_b, ca_w, ca_b, w1, b1, w2, b2 = params
    scale = 1.0 / np.sqrt(HDIM)
    # Fold the 1/sqrt(d_k) softmax scale into the Q projection (weight AND bias).
    sa_wqkv = jnp.concatenate([sa_w[0] * scale, sa_w[1], sa_w[2]], axis=1)   # (D, 3D)
    sa_bqkv = jnp.concatenate([sa_b[0] * scale, sa_b[1], sa_b[2]], axis=1)   # (1, 3D)
    ca_wq = ca_w[0] * scale                                                  # (D, D)
    ca_bq = ca_b[0] * scale                                                  # (1, D)
    ca_wkv = jnp.concatenate([ca_w[1], ca_w[2]], axis=1)                     # (D, 2D)
    ca_bkv = jnp.concatenate([ca_b[1], ca_b[2]], axis=1)                     # (1, 2D)
    return (ln_g, ln_b,
            sa_wqkv, sa_bqkv, sa_w[3], sa_b[3],
            ca_wq, ca_bq, ca_wkv, ca_bkv, ca_w[3], ca_b[3],
            w1, b1, w2, b2)


def mask_to_bias(mask):
    """mask (N, TQ, TK), 1.0 == masked -> additive bias (0 / -1e4). One-time per mask."""
    return jnp.where(mask > 0, -10000.0, 0.0).astype(jnp.float32)


@jax.jit
def decoder_layer(dec_in, enc_out, dec_bias, denc_bias, packed):
    vmem = pl.BlockSpec(memory_space=pltpu.MemorySpace.VMEM)  # whole-array, VMEM resident
    n_inputs = 4 + len(packed)
    return pl.pallas_call(
        decoder_layer_kernel,
        out_shape=jax.ShapeDtypeStruct((N, TQ, D), dec_in.dtype),
        in_specs=[vmem] * n_inputs,
        out_specs=vmem,
    )(dec_in, enc_out, dec_bias, denc_bias, *packed)


# ------------------------------- pure-JAX reference (for check) -------------------------------
def reference(dec_in, enc_out, dec_mask, dec_enc_mask, params):
    ln_g, ln_b, sa_w, sa_b, ca_w, ca_b, w1, b1, w2, b2 = params

    def layernorm(x, g, b):
        mu = x.mean(-1, keepdims=True)
        var = ((x - mu) ** 2).mean(-1, keepdims=True)
        return (x - mu) / jnp.sqrt(var + EPS) * g + b

    def mha(q_in, kv_in, mask, w, bb):
        Nb, Tq, _ = q_in.shape
        Tk = kv_in.shape[1]
        Q = (q_in @ w[0] + bb[0]).reshape(Nb, Tq, NHEADS, HDIM).transpose(0, 2, 1, 3)
        K = (kv_in @ w[1] + bb[1]).reshape(Nb, Tk, NHEADS, HDIM).transpose(0, 2, 1, 3)
        V = (kv_in @ w[2] + bb[2]).reshape(Nb, Tk, NHEADS, HDIM).transpose(0, 2, 1, 3)
        scores = jnp.einsum('nhqd,nhkd->nhqk', Q, K) / np.sqrt(HDIM)
        scores = jnp.where(mask[:, None] > 0, -10000.0, scores)
        attn = jax.nn.softmax(scores, axis=-1)
        out = jnp.einsum('nhqk,nhkd->nhqd', attn, V).transpose(0, 2, 1, 3).reshape(Nb, Tq, D)
        return out @ w[3] + bb[3]

    x = layernorm(dec_in, ln_g[0], ln_b[0])
    x = x + mha(x, x, dec_mask, sa_w, sa_b)
    x = layernorm(x, ln_g[1], ln_b[1])
    x = x + mha(x, enc_out, dec_enc_mask, ca_w, ca_b)
    x = layernorm(x, ln_g[2], ln_b[2])
    ff = jnp.maximum(x @ w1 + b1, 0.0) @ w2 + b2
    return x + ff


# ------------------------------------------ setup ------------------------------------------
def init_params(key):
    ks = jax.random.split(key, 10)
    std_attn = np.sqrt(2.0 / (D + HDIM))       # matches the torch normal_ init scale
    ln_g = 1.0 + 0.1 * jax.random.normal(ks[0], (3, 1, D))
    ln_b = 0.1 * jax.random.normal(ks[1], (3, 1, D))
    sa_w = std_attn * jax.random.normal(ks[2], (4, D, D))   # stored transposed (in, out)
    sa_b = 0.01 * jax.random.normal(ks[3], (4, 1, D))
    ca_w = std_attn * jax.random.normal(ks[4], (4, D, D))
    ca_b = 0.01 * jax.random.normal(ks[5], (4, 1, D))
    w1 = np.sqrt(2.0 / (D + DFF)) * jax.random.normal(ks[6], (D, DFF))   # conv1 weight[:, :, 0].T
    b1 = 0.01 * jax.random.normal(ks[7], (1, DFF))
    w2 = np.sqrt(2.0 / (D + DFF)) * jax.random.normal(ks[8], (DFF, D))   # conv2 weight[:, :, 0].T
    b2 = 0.01 * jax.random.normal(ks[9], (1, D))
    return tuple(p.astype(jnp.float32)
                 for p in (ln_g, ln_b, sa_w, sa_b, ca_w, ca_b, w1, b1, w2, b2))


if __name__ == "__main__":
    key = jax.random.PRNGKey(0)
    k_in, k_enc, k_par = jax.random.split(key, 3)

    dec_in = jax.random.normal(k_in, (N, TQ, D), dtype=jnp.float32)
    enc_out = jax.random.normal(k_enc, (N, TK, D), dtype=jnp.float32)

    # causal self-attention mask (1.0 == masked, matching masked_fill semantics)
    causal = (jnp.arange(TQ)[:, None] < jnp.arange(TQ)[None, :]).astype(jnp.float32)
    dec_mask = jnp.broadcast_to(causal, (N, TQ, TQ))
    # cross-attention mask: mask out the last encoder position
    dec_enc_mask = jnp.zeros((N, TQ, TK), jnp.float32).at[:, :, TK - 1].set(1.0)

    params = init_params(k_par)

    # one-time packing / mask->bias conversion (cached; NOT in the per-call path)
    packed = pack_params(params)
    dec_bias = mask_to_bias(dec_mask)           # (N, TQ, TQ)
    denc_bias = mask_to_bias(dec_enc_mask)      # (N, TQ, TK)

    out = decoder_layer(dec_in, enc_out, dec_bias, denc_bias, packed)
    out = jax.block_until_ready(out)

    ref = reference(dec_in, enc_out, dec_mask, dec_enc_mask, params)
    np.testing.assert_allclose(np.asarray(out), np.asarray(ref), rtol=1e-3, atol=1e-3)

    print("KERNEL_OK")
</pallas_src>

<mosaic_0001>
module attributes {stable_mosaic.version = 11 : i64} {
  func.func @decoder_layer_kernel(%arg0: memref<2x8x32xf32, #tpu.memory_space<vmem>>, %arg1: memref<2x8x32xf32, #tpu.memory_space<vmem>>, %arg2: memref<2x8x8xf32, #tpu.memory_space<vmem>>, %arg3: memref<2x8x8xf32, #tpu.memory_space<vmem>>, %arg4: memref<3x1x32xf32, #tpu.memory_space<vmem>>, %arg5: memref<3x1x32xf32, #tpu.memory_space<vmem>>, %arg6: memref<32x96xf32, #tpu.memory_space<vmem>>, %arg7: memref<1x96xf32, #tpu.memory_space<vmem>>, %arg8: memref<32x32xf32, #tpu.memory_space<vmem>>, %arg9: memref<1x32xf32, #tpu.memory_space<vmem>>, %arg10: memref<32x32xf32, #tpu.memory_space<vmem>>, %arg11: memref<1x32xf32, #tpu.memory_space<vmem>>, %arg12: memref<32x64xf32, #tpu.memory_space<vmem>>, %arg13: memref<1x64xf32, #tpu.memory_space<vmem>>, %arg14: memref<32x32xf32, #tpu.memory_space<vmem>>, %arg15: memref<1x32xf32, #tpu.memory_space<vmem>>, %arg16: memref<32x64xf32, #tpu.memory_space<vmem>>, %arg17: memref<1x64xf32, #tpu.memory_space<vmem>>, %arg18: memref<64x32xf32, #tpu.memory_space<vmem>>, %arg19: memref<1x32xf32, #tpu.memory_space<vmem>>, %arg20: memref<2x8x32xf32, #tpu.memory_space<vmem>>) attributes {dimension_semantics = [], scalar_prefetch = 0 : i64, scratch_operands = 0 : i64, tpu.core_type = #tpu.core_type<tc>} {
    %c0 = arith.constant 0 : index
    %c0_0 = arith.constant 0 : index
    %c0_1 = arith.constant 0 : index
    %0 = vector.load %arg0[%c0, %c0_0, %c0_1] : memref<2x8x32xf32, #tpu.memory_space<vmem>>, vector<2x8x32xf32>
    %1 = vector.shape_cast %0 : vector<2x8x32xf32> to vector<16x32xf32>
    %c0_2 = arith.constant 0 : index
    %c0_3 = arith.constant 0 : index
    %c0_4 = arith.constant 0 : index
    %2 = vector.load %arg1[%c0_2, %c0_3, %c0_4] : memref<2x8x32xf32, #tpu.memory_space<vmem>>, vector<2x8x32xf32>
    %3 = vector.shape_cast %2 : vector<2x8x32xf32> to vector<16x32xf32>
    %cst = arith.constant dense<0.000000e+00> : vector<16xf32>
    %4 = vector.multi_reduction <add>, %1, %cst [1] : vector<16x32xf32> to vector<16xf32>
    %5 = vector.shape_cast %4 : vector<16xf32> to vector<16x1xf32>
    %cst_5 = arith.constant 3.200000e+01 : f32
    %6 = vector.broadcast %cst_5 : f32 to vector<16x1xf32>
    %7 = arith.divf %5, %6 : vector<16x1xf32>
    %8 = vector.broadcast %7 : vector<16x1xf32> to vector<16x32xf32>
    %9 = arith.subf %1, %8 : vector<16x32xf32>
    %10 = arith.mulf %9, %9 : vector<16x32xf32>
    %cst_6 = arith.constant dense<0.000000e+00> : vector<16xf32>
    %11 = vector.multi_reduction <add>, %10, %cst_6 [1] : vector<16x32xf32> to vector<16xf32>
    %12 = vector.shape_cast %11 : vector<16xf32> to vector<16x1xf32>
    %cst_7 = arith.constant 3.200000e+01 : f32
    %13 = vector.broadcast %cst_7 : f32 to vector<16x1xf32>
    %14 = arith.divf %12, %13 : vector<16x1xf32>
    %15 = vector.broadcast %7 : vector<16x1xf32> to vector<16x32xf32>
    %16 = arith.subf %1, %15 : vector<16x32xf32>
    %cst_8 = arith.constant 9.99999974E-6 : f32
    %17 = vector.broadcast %cst_8 : f32 to vector<16x1xf32>
    %18 = arith.addf %14, %17 : vector<16x1xf32>
    %19 = math.rsqrt %18 : vector<16x1xf32>
    %20 = vector.broadcast %19 : vector<16x1xf32> to vector<16x32xf32>
    %21 = arith.mulf %16, %20 : vector<16x32xf32>
    %c0_9 = arith.constant 0 : index
    %c0_10 = arith.constant 0 : index
    %c0_11 = arith.constant 0 : index
    %22 = vector.load %arg4[%c0_9, %c0_10, %c0_11] : memref<3x1x32xf32, #tpu.memory_space<vmem>>, vector<1x1x32xf32>
    %23 = vector.shape_cast %22 : vector<1x1x32xf32> to vector<1x32xf32>
    %24 = vector.broadcast %23 : vector<1x32xf32> to vector<16x32xf32>
    %25 = arith.mulf %21, %24 : vector<16x32xf32>
    %c0_12 = arith.constant 0 : index
    %c0_13 = arith.constant 0 : index
    %c0_14 = arith.constant 0 : index
    %26 = vector.load %arg5[%c0_12, %c0_13, %c0_14] : memref<3x1x32xf32, #tpu.memory_space<vmem>>, vector<1x1x32xf32>
    %27 = vector.shape_cast %26 : vector<1x1x32xf32> to vector<1x32xf32>
    %28 = vector.broadcast %27 : vector<1x32xf32> to vector<16x32xf32>
    %29 = arith.addf %25, %28 : vector<16x32xf32>
    %c0_15 = arith.constant 0 : index
    %c0_16 = arith.constant 0 : index
    %30 = vector.load %arg6[%c0_15, %c0_16] : memref<32x96xf32, #tpu.memory_space<vmem>>, vector<32x96xf32>
    %cst_17 = arith.constant dense<0.000000e+00> : vector<16x96xf32>
    %31 = tpu.matmul %29, %30, %cst_17 {dimension_numbers = #tpu.dot_dimension_numbers<[1], [0], [0], [1], [0, 0, 1, 1], [], []>} : vector<16x32xf32>, vector<32x96xf32>, vector<16x96xf32> -> vector<16x96xf32>
    %c0_18 = arith.constant 0 : index
    %c0_19 = arith.constant 0 : index
    %32 = vector.load %arg7[%c0_18, %c0_19] : memref<1x96xf32, #tpu.memory_space<vmem>>, vector<1x96xf32>
    %33 = vector.broadcast %32 : vector<1x96xf32> to vector<16x96xf32>
    %34 = arith.addf %31, %33 : vector<16x96xf32>
    %35 = vector.extract_strided_slice %34 {offsets = [0, 0], sizes = [16, 32], strides = [1, 1]} : vector<16x96xf32> to vector<16x32xf32>
    %36 = vector.extract_strided_slice %34 {offsets = [0, 32], sizes = [16, 32], strides = [1, 1]} : vector<16x96xf32> to vector<16x32xf32>
    %37 = vector.extract_strided_slice %34 {offsets = [0, 64], sizes = [16, 32], strides = [1, 1]} : vector<16x96xf32> to vector<16x32xf32>
    %c0_20 = arith.constant 0 : index
    %c0_21 = arith.constant 0 : index
    %c0_22 = arith.constant 0 : index
    %38 = vector.load %arg2[%c0_20, %c0_21, %c0_22] : memref<2x8x8xf32, #tpu.memory_space<vmem>>, vector<2x8x8xf32>
    %39 = vector.shape_cast %38 : vector<2x8x8xf32> to vector<16x8xf32>
    %c0_23 = arith.constant 0 : index
    %c0_24 = arith.constant 0 : index
    %40 = vector.load %arg8[%c0_23, %c0_24] : memref<32x32xf32, #tpu.memory_space<vmem>>, vector<32x32xf32>
    %c0_25 = arith.constant 0 : index
    %c0_26 = arith.constant 0 : index
    %41 = vector.load %arg9[%c0_25, %c0_26] : memref<1x32xf32, #tpu.memory_space<vmem>>, vector<1x32xf32>
    %42 = vector.extract_strided_slice %35 {offsets = [0, 0], sizes = [16, 8], strides = [1, 1]} : vector<16x32xf32> to vector<16x8xf32>
    %43 = vector.shape_cast %42 : vector<16x8xf32> to vector<2x8x8xf32>
    %44 = vector.extract_strided_slice %36 {offsets = [0, 0], sizes = [16, 8], strides = [1, 1]} : vector<16x32xf32> to vector<16x8xf32>
    %45 = vector.shape_cast %44 : vector<16x8xf32> to vector<2x8x8xf32>
    %46 = vector.extract_strided_slice %37 {offsets = [0, 0], sizes = [16, 8], strides = [1, 1]} : vector<16x32xf32> to vector<16x8xf32>
    %47 = vector.shape_cast %46 : vector<16x8xf32> to vector<2x8x8xf32>
    "tpu.trace_start"() <{level = 10 : i32, message = "nqd,nkd->nqk"}> : () -> ()
    %cst_27 = arith.constant dense<0.000000e+00> : vector<2x8x8xf32>
    %48 = tpu.matmul %43, %45, %cst_27 {dimension_numbers = #tpu.dot_dimension_numbers<[2], [2], [1], [1], [0, 0, 0, 1, 1, 1], [0], [0]>} : vector<2x8x8xf32>, vector<2x8x8xf32>, vector<2x8x8xf32> -> vector<2x8x8xf32>
    "tpu.trace_stop"() : () -> ()
    %49 = vector.shape_cast %48 : vector<2x8x8xf32> to vector<16x8xf32>
    %50 = arith.addf %49, %39 : vector<16x8xf32>
    %cst_28 = arith.constant dense<0xFF800000> : vector<16xf32>
    %51 = vector.multi_reduction <maximumf>, %50, %cst_28 [1] : vector<16x8xf32> to vector<16xf32>
    %52 = vector.shape_cast %51 : vector<16xf32> to vector<16x1xf32>
    %53 = vector.broadcast %52 : vector<16x1xf32> to vector<16x8xf32>
    %54 = arith.subf %50, %53 : vector<16x8xf32>
    %55 = math.exp %54 : vector<16x8xf32>
    %cst_29 = arith.constant dense<0.000000e+00> : vector<16xf32>
    %56 = vector.multi_reduction <add>, %55, %cst_29 [1] : vector<16x8xf32> to vector<16xf32>
    %57 = vector.shape_cast %56 : vector<16xf32> to vector<16x1xf32>
    %58 = vector.broadcast %57 : vector<16x1xf32> to vector<16x8xf32>
    %59 = arith.divf %55, %58 : vector<16x8xf32>
    %60 = vector.shape_cast %59 : vector<16x8xf32> to vector<2x8x8xf32>
    "tpu.trace_start"() <{level = 10 : i32, message = "nqk,nkd->nqd"}> : () -> ()
    %cst_30 = arith.constant dense<0.000000e+00> : vector<2x8x8xf32>
    %61 = tpu.matmul %60, %47, %cst_30 {dimension_numbers = #tpu.dot_dimension_numbers<[2], [1], [1], [2], [0, 0, 0, 1, 1, 2], [0], [0]>} : vector<2x8x8xf32>, vector<2x8x8xf32>, vector<2x8x8xf32> -> vector<2x8x8xf32>
    "tpu.trace_stop"() : () -> ()
    %62 = vector.shape_cast %61 : vector<2x8x8xf32> to vector<16x8xf32>
    %63 = vector.extract_strided_slice %35 {offsets = [0, 8], sizes = [16, 8], strides = [1, 1]} : vector<16x32xf32> to vector<16x8xf32>
    %64 = vector.shape_cast %63 : vector<16x8xf32> to vector<2x8x8xf32>
    %65 = vector.extract_strided_slice %36 {offsets = [0, 8], sizes = [16, 8], strides = [1, 1]} : vector<16x32xf32> to vector<16x8xf32>
    %66 = vector.shape_cast %65 : vector<16x8xf32> to vector<2x8x8xf32>
    %67 = vector.extract_strided_slice %37 {offsets = [0, 8], sizes = [16, 8], strides = [1, 1]} : vector<16x32xf32> to vector<16x8xf32>
    %68 = vector.shape_cast %67 : vector<16x8xf32> to vector<2x8x8xf32>
    "tpu.trace_start"() <{level = 10 : i32, message = "nqd,nkd->nqk"}> : () -> ()
    %cst_31 = arith.constant dense<0.000000e+00> : vector<2x8x8xf32>
    %69 = tpu.matmul %64, %66, %cst_31 {dimension_numbers = #tpu.dot_dimension_numbers<[2], [2], [1], [1], [0, 0, 0, 1, 1, 1], [0], [0]>} : vector<2x8x8xf32>, vector<2x8x8xf32>, vector<2x8x8xf32> -> vector<2x8x8xf32>
    "tpu.trace_stop"() : () -> ()
    %70 = vector.shape_cast %69 : vector<2x8x8xf32> to vector<16x8xf32>
    %71 = arith.addf %70, %39 : vector<16x8xf32>
    %cst_32 = arith.constant dense<0xFF800000> : vector<16xf32>
    %72 = vector.multi_reduction <maximumf>, %71, %cst_32 [1] : vector<16x8xf32> to vector<16xf32>
    %73 = vector.shape_cast %72 : vector<16xf32> to vector<16x1xf32>
    %74 = vector.broadcast %73 : vector<16x1xf32> to vector<16x8xf32>
    %75 = arith.subf %71, %74 : vector<16x8xf32>
    %76 = math.exp %75 : vector<16x8xf32>
    %cst_33 = arith.constant dense<0.000000e+00> : vector<16xf32>
    %77 = vector.multi_reduction <add>, %76, %cst_33 [1] : vector<16x8xf32> to vector<16xf32>
    %78 = vector.shape_cast %77 : vector<16xf32> to vector<16x1xf32>
    %79 = vector.broadcast %78 : vector<16x1xf32> to vector<16x8xf32>
    %80 = arith.divf %76, %79 : vector<16x8xf32>
    %81 = vector.shape_cast %80 : vector<16x8xf32> to vector<2x8x8xf32>
    "tpu.trace_start"() <{level = 10 : i32, message = "nqk,nkd->nqd"}> : () -> ()
    %cst_34 = arith.constant dense<0.000000e+00> : vector<2x8x8xf32>
    %82 = tpu.matmul %81, %68, %cst_34 {dimension_numbers = #tpu.dot_dimension_numbers<[2], [1], [1], [2], [0, 0, 0, 1, 1, 2], [0], [0]>} : vector<2x8x8xf32>, vector<2x8x8xf32>, vector<2x8x8xf32> -> vector<2x8x8xf32>
    "tpu.trace_stop"() : () -> ()
    %83 = vector.shape_cast %82 : vector<2x8x8xf32> to vector<16x8xf32>
    %84 = vector.extract_strided_slice %35 {offsets = [0, 16], sizes = [16, 8], strides = [1, 1]} : vector<16x32xf32> to vector<16x8xf32>
    %85 = vector.shape_cast %84 : vector<16x8xf32> to vector<2x8x8xf32>
    %86 = vector.extract_strided_slice %36 {offsets = [0, 16], sizes = [16, 8], strides = [1, 1]} : vector<16x32xf32> to vector<16x8xf32>
    %87 = vector.shape_cast %86 : vector<16x8xf32> to vector<2x8x8xf32>
    %88 = vector.extract_strided_slice %37 {offsets = [0, 16], sizes = [16, 8], strides = [1, 1]} : vector<16x32xf32> to vector<16x8xf32>
    %89 = vector.shape_cast %88 : vector<16x8xf32> to vector<2x8x8xf32>
    "tpu.trace_start"() <{level = 10 : i32, message = "nqd,nkd->nqk"}> : () -> ()
    %cst_35 = arith.constant dense<0.000000e+00> : vector<2x8x8xf32>
    %90 = tpu.matmul %85, %87, %cst_35 {dimension_numbers = #tpu.dot_dimension_numbers<[2], [2], [1], [1], [0, 0, 0, 1, 1, 1], [0], [0]>} : vector<2x8x8xf32>, vector<2x8x8xf32>, vector<2x8x8xf32> -> vector<2x8x8xf32>
    "tpu.trace_stop"() : () -> ()
    %91 = vector.shape_cast %90 : vector<2x8x8xf32> to vector<16x8xf32>
    %92 = arith.addf %91, %39 : vector<16x8xf32>
    %cst_36 = arith.constant dense<0xFF800000> : vector<16xf32>
    %93 = vector.multi_reduction <maximumf>, %92, %cst_36 [1] : vector<16x8xf32> to vector<16xf32>
    %94 = vector.shape_cast %93 : vector<16xf32> to vector<16x1xf32>
    %95 = vector.broadcast %94 : vector<16x1xf32> to vector<16x8xf32>
    %96 = arith.subf %92, %95 : vector<16x8xf32>
    %97 = math.exp %96 : vector<16x8xf32>
    %cst_37 = arith.constant dense<0.000000e+00> : vector<16xf32>
    %98 = vector.multi_reduction <add>, %97, %cst_37 [1] : vector<16x8xf32> to vector<16xf32>
    %99 = vector.shape_cast %98 : vector<16xf32> to vector<16x1xf32>
    %100 = vector.broadcast %99 : vector<16x1xf32> to vector<16x8xf32>
    %101 = arith.divf %97, %100 : vector<16x8xf32>
    %102 = vector.shape_cast %101 : vector<16x8xf32> to vector<2x8x8xf32>
    "tpu.trace_start"() <{level = 10 : i32, message = "nqk,nkd->nqd"}> : () -> ()
    %cst_38 = arith.constant dense<0.000000e+00> : vector<2x8x8xf32>
    %103 = tpu.matmul %102, %89, %cst_38 {dimension_numbers = #tpu.dot_dimension_numbers<[2], [1], [1], [2], [0, 0, 0, 1, 1, 2], [0], [0]>} : vector<2x8x8xf32>, vector<2x8x8xf32>, vector<2x8x8xf32> -> vector<2x8x8xf32>
    "tpu.trace_stop"() : () -> ()
    %104 = vector.shape_cast %103 : vector<2x8x8xf32> to vector<16x8xf32>
    %105 = vector.extract_strided_slice %35 {offsets = [0, 24], sizes = [16, 8], strides = [1, 1]} : vector<16x32xf32> to vector<16x8xf32>
    %106 = vector.shape_cast %105 : vector<16x8xf32> to vector<2x8x8xf32>
    %107 = vector.extract_strided_slice %36 {offsets = [0, 24], sizes = [16, 8], strides = [1, 1]} : vector<16x32xf32> to vector<16x8xf32>
    %108 = vector.shape_cast %107 : vector<16x8xf32> to vector<2x8x8xf32>
    %109 = vector.extract_strided_slice %37 {offsets = [0, 24], sizes = [16, 8], strides = [1, 1]} : vector<16x32xf32> to vector<16x8xf32>
    %110 = vector.shape_cast %109 : vector<16x8xf32> to vector<2x8x8xf32>
    "tpu.trace_start"() <{level = 10 : i32, message = "nqd,nkd->nqk"}> : () -> ()
    %cst_39 = arith.constant dense<0.000000e+00> : vector<2x8x8xf32>
    %111 = tpu.matmul %106, %108, %cst_39 {dimension_numbers = #tpu.dot_dimension_numbers<[2], [2], [1], [1], [0, 0, 0, 1, 1, 1], [0], [0]>} : vector<2x8x8xf32>, vector<2x8x8xf32>, vector<2x8x8xf32> -> vector<2x8x8xf32>
    "tpu.trace_stop"() : () -> ()
    %112 = vector.shape_cast %111 : vector<2x8x8xf32> to vector<16x8xf32>
    %113 = arith.addf %112, %39 : vector<16x8xf32>
    %cst_40 = arith.constant dense<0xFF800000> : vector<16xf32>
    %114 = vector.multi_reduction <maximumf>, %113, %cst_40 [1] : vector<16x8xf32> to vector<16xf32>
    %115 = vector.shape_cast %114 : vector<16xf32> to vector<16x1xf32>
    %116 = vector.broadcast %115 : vector<16x1xf32> to vector<16x8xf32>
    %117 = arith.subf %113, %116 : vector<16x8xf32>
    %118 = math.exp %117 : vector<16x8xf32>
    %cst_41 = arith.constant dense<0.000000e+00> : vector<16xf32>
    %119 = vector.multi_reduction <add>, %118, %cst_41 [1] : vector<16x8xf32> to vector<16xf32>
    %120 = vector.shape_cast %119 : vector<16xf32> to vector<16x1xf32>
    %121 = vector.broadcast %120 : vector<16x1xf32> to vector<16x8xf32>
    %122 = arith.divf %118, %121 : vector<16x8xf32>
    %123 = vector.shape_cast %122 : vector<16x8xf32> to vector<2x8x8xf32>
    "tpu.trace_start"() <{level = 10 : i32, message = "nqk,nkd->nqd"}> : () -> ()
    %cst_42 = arith.constant dense<0.000000e+00> : vector<2x8x8xf32>
    %124 = tpu.matmul %123, %110, %cst_42 {dimension_numbers = #tpu.dot_dimension_numbers<[2], [1], [1], [2], [0, 0, 0, 1, 1, 2], [0], [0]>} : vector<2x8x8xf32>, vector<2x8x8xf32>, vector<2x8x8xf32> -> vector<2x8x8xf32>
    "tpu.trace_stop"() : () -> ()
    %125 = vector.shape_cast %124 : vector<2x8x8xf32> to vector<16x8xf32>
    %126 = tpu.concatenate %62, %83, %104, %125 in 1 : vector<16x8xf32>, vector<16x8xf32>, vector<16x8xf32>, vector<16x8xf32> -> vector<16x32xf32>
    %cst_43 = arith.constant dense<0.000000e+00> : vector<16x32xf32>
    %127 = tpu.matmul %126, %40, %cst_43 {dimension_numbers = #tpu.dot_dimension_numbers<[1], [0], [0], [1], [0, 0, 1, 1], [], []>} : vector<16x32xf32>, vector<32x32xf32>, vector<16x32xf32> -> vector<16x32xf32>
    %128 = vector.broadcast %41 : vector<1x32xf32> to vector<16x32xf32>
    %129 = arith.addf %127, %128 : vector<16x32xf32>
    %130 = arith.addf %29, %129 : vector<16x32xf32>
    %cst_44 = arith.constant dense<0.000000e+00> : vector<16xf32>
    %131 = vector.multi_reduction <add>, %130, %cst_44 [1] : vector<16x32xf32> to vector<16xf32>
    %132 = vector.shape_cast %131 : vector<16xf32> to vector<16x1xf32>
    %cst_45 = arith.constant 3.200000e+01 : f32
    %133 = vector.broadcast %cst_45 : f32 to vector<16x1xf32>
    %134 = arith.divf %132, %133 : vector<16x1xf32>
    %135 = vector.broadcast %134 : vector<16x1xf32> to vector<16x32xf32>
    %136 = arith.subf %130, %135 : vector<16x32xf32>
    %137 = arith.mulf %136, %136 : vector<16x32xf32>
    %cst_46 = arith.constant dense<0.000000e+00> : vector<16xf32>
    %138 = vector.multi_reduction <add>, %137, %cst_46 [1] : vector<16x32xf32> to vector<16xf32>
    %139 = vector.shape_cast %138 : vector<16xf32> to vector<16x1xf32>
    %cst_47 = arith.constant 3.200000e+01 : f32
    %140 = vector.broadcast %cst_47 : f32 to vector<16x1xf32>
    %141 = arith.divf %139, %140 : vector<16x1xf32>
    %142 = vector.broadcast %134 : vector<16x1xf32> to vector<16x32xf32>
    %143 = arith.subf %130, %142 : vector<16x32xf32>
    %cst_48 = arith.constant 9.99999974E-6 : f32
    %144 = vector.broadcast %cst_48 : f32 to vector<16x1xf32>
    %145 = arith.addf %141, %144 : vector<16x1xf32>
    %146 = math.rsqrt %145 : vector<16x1xf32>
    %147 = vector.broadcast %146 : vector<16x1xf32> to vector<16x32xf32>
    %148 = arith.mulf %143, %147 : vector<16x32xf32>
    %c1 = arith.constant 1 : index
    %c0_49 = arith.constant 0 : index
    %c0_50 = arith.constant 0 : index
    %149 = vector.load %arg4[%c1, %c0_49, %c0_50] : memref<3x1x32xf32, #tpu.memory_space<vmem>>, vector<1x1x32xf32>
    %150 = vector.shape_cast %149 : vector<1x1x32xf32> to vector<1x32xf32>
    %151 = vector.broadcast %150 : vector<1x32xf32> to vector<16x32xf32>
    %152 = arith.mulf %148, %151 : vector<16x32xf32>
    %c1_51 = arith.constant 1 : index
    %c0_52 = arith.constant 0 : index
    %c0_53 = arith.constant 0 : index
    %153 = vector.load %arg5[%c1_51, %c0_52, %c0_53] : memref<3x1x32xf32, #tpu.memory_space<vmem>>, vector<1x1x32xf32>
    %154 = vector.shape_cast %153 : vector<1x1x32xf32> to vector<1x32xf32>
    %155 = vector.broadcast %154 : vector<1x32xf32> to vector<16x32xf32>
    %156 = arith.addf %152, %155 : vector<16x32xf32>
    %c0_54 = arith.constant 0 : index
    %c0_55 = arith.constant 0 : index
    %157 = vector.load %arg10[%c0_54, %c0_55] : memref<32x32xf32, #tpu.memory_space<vmem>>, vector<32x32xf32>
    %cst_56 = arith.constant dense<0.000000e+00> : vector<16x32xf32>
    %158 = tpu.matmul %156, %157, %cst_56 {dimension_numbers = #tpu.dot_dimension_numbers<[1], [0], [0], [1], [0, 0, 1, 1], [], []>} : vector<16x32xf32>, vector<32x32xf32>, vector<16x32xf32> -> vector<16x32xf32>
    %c0_57 = arith.constant 0 : index
    %c0_58 = arith.constant 0 : index
    %159 = vector.load %arg11[%c0_57, %c0_58] : memref<1x32xf32, #tpu.memory_space<vmem>>, vector<1x32xf32>
    %160 = vector.broadcast %159 : vector<1x32xf32> to vector<16x32xf32>
    %161 = arith.addf %158, %160 : vector<16x32xf32>
    %c0_59 = arith.constant 0 : index
    %c0_60 = arith.constant 0 : index
    %162 = vector.load %arg12[%c0_59, %c0_60] : memref<32x64xf32, #tpu.memory_space<vmem>>, vector<32x64xf32>
    %cst_61 = arith.constant dense<0.000000e+00> : vector<16x64xf32>
    %163 = tpu.matmul %3, %162, %cst_61 {dimension_numbers = #tpu.dot_dimension_numbers<[1], [0], [0], [1], [0, 0, 1, 1], [], []>} : vector<16x32xf32>, vector<32x64xf32>, vector<16x64xf32> -> vector<16x64xf32>
    %c0_62 = arith.constant 0 : index
    %c0_63 = arith.constant 0 : index
    %164 = vector.load %arg13[%c0_62, %c0_63] : memref<1x64xf32, #tpu.memory_space<vmem>>, vector<1x64xf32>
    %165 = vector.broadcast %164 : vector<1x64xf32> to vector<16x64xf32>
    %166 = arith.addf %163, %165 : vector<16x64xf32>
    %167 = vector.extract_strided_slice %166 {offsets = [0, 0], sizes = [16, 32], strides = [1, 1]} : vector<16x64xf32> to vector<16x32xf32>
    %168 = vector.extract_strided_slice %166 {offsets = [0, 32], sizes = [16, 32], strides = [1, 1]} : vector<16x64xf32> to vector<16x32xf32>
    %c0_64 = arith.constant 0 : index
    %c0_65 = arith.constant 0 : index
    %c0_66 = arith.constant 0 : index
    %169 = vector.load %arg3[%c0_64, %c0_65, %c0_66] : memref<2x8x8xf32, #tpu.memory_space<vmem>>, vector<2x8x8xf32>
    %170 = vector.shape_cast %169 : vector<2x8x8xf32> to vector<16x8xf32>
    %c0_67 = arith.constant 0 : index
    %c0_68 = arith.constant 0 : index
    %171 = vector.load %arg14[%c0_67, %c0_68] : memref<32x32xf32, #tpu.memory_space<vmem>>, vector<32x32xf32>
    %c0_69 = arith.constant 0 : index
    %c0_70 = arith.constant 0 : index
    %172 = vector.load %arg15[%c0_69, %c0_70] : memref<1x32xf32, #tpu.memory_space<vmem>>, vector<1x32xf32>
    %173 = vector.extract_strided_slice %161 {offsets = [0, 0], sizes = [16, 8], strides = [1, 1]} : vector<16x32xf32> to vector<16x8xf32>
    %174 = vector.shape_cast %173 : vector<16x8xf32> to vector<2x8x8xf32>
    %175 = vector.extract_strided_slice %167 {offsets = [0, 0], sizes = [16, 8], strides = [1, 1]} : vector<16x32xf32> to vector<16x8xf32>
    %176 = vector.shape_cast %175 : vector<16x8xf32> to vector<2x8x8xf32>
    %177 = vector.extract_strided_slice %168 {offsets = [0, 0], sizes = [16, 8], strides = [1, 1]} : vector<16x32xf32> to vector<16x8xf32>
    %178 = vector.shape_cast %177 : vector<16x8xf32> to vector<2x8x8xf32>
    "tpu.trace_start"() <{level = 10 : i32, message = "nqd,nkd->nqk"}> : () -> ()
    %cst_71 = arith.constant dense<0.000000e+00> : vector<2x8x8xf32>
    %179 = tpu.matmul %174, %176, %cst_71 {dimension_numbers = #tpu.dot_dimension_numbers<[2], [2], [1], [1], [0, 0, 0, 1, 1, 1], [0], [0]>} : vector<2x8x8xf32>, vector<2x8x8xf32>, vector<2x8x8xf32> -> vector<2x8x8xf32>
    "tpu.trace_stop"() : () -> ()
    %180 = vector.shape_cast %179 : vector<2x8x8xf32> to vector<16x8xf32>
    %181 = arith.addf %180, %170 : vector<16x8xf32>
    %cst_72 = arith.constant dense<0xFF800000> : vector<16xf32>
    %182 = vector.multi_reduction <maximumf>, %181, %cst_72 [1] : vector<16x8xf32> to vector<16xf32>
    %183 = vector.shape_cast %182 : vector<16xf32> to vector<16x1xf32>
    %184 = vector.broadcast %183 : vector<16x1xf32> to vector<16x8xf32>
    %185 = arith.subf %181, %184 : vector<16x8xf32>
    %186 = math.exp %185 : vector<16x8xf32>
    %cst_73 = arith.constant dense<0.000000e+00> : vector<16xf32>
    %187 = vector.multi_reduction <add>, %186, %cst_73 [1] : vector<16x8xf32> to vector<16xf32>
    %188 = vector.shape_cast %187 : vector<16xf32> to vector<16x1xf32>
    %189 = vector.broadcast %188 : vector<16x1xf32> to vector<16x8xf32>
    %190 = arith.divf %186, %189 : vector<16x8xf32>
    %191 = vector.shape_cast %190 : vector<16x8xf32> to vector<2x8x8xf32>
    "tpu.trace_start"() <{level = 10 : i32, message = "nqk,nkd->nqd"}> : () -> ()
    %cst_74 = arith.constant dense<0.000000e+00> : vector<2x8x8xf32>
    %192 = tpu.matmul %191, %178, %cst_74 {dimension_numbers = #tpu.dot_dimension_numbers<[2], [1], [1], [2], [0, 0, 0, 1, 1, 2], [0], [0]>} : vector<2x8x8xf32>, vector<2x8x8xf32>, vector<2x8x8xf32> -> vector<2x8x8xf32>
    "tpu.trace_stop"() : () -> ()
    %193 = vector.shape_cast %192 : vector<2x8x8xf32> to vector<16x8xf32>
    %194 = vector.extract_strided_slice %161 {offsets = [0, 8], sizes = [16, 8], strides = [1, 1]} : vector<16x32xf32> to vector<16x8xf32>
    %195 = vector.shape_cast %194 : vector<16x8xf32> to vector<2x8x8xf32>
    %196 = vector.extract_strided_slice %167 {offsets = [0, 8], sizes = [16, 8], strides = [1, 1]} : vector<16x32xf32> to vector<16x8xf32>
    %197 = vector.shape_cast %196 : vector<16x8xf32> to vector<2x8x8xf32>
    %198 = vector.extract_strided_slice %168 {offsets = [0, 8], sizes = [16, 8], strides = [1, 1]} : vector<16x32xf32> to vector<16x8xf32>
    %199 = vector.shape_cast %198 : vector<16x8xf32> to vector<2x8x8xf32>
    "tpu.trace_start"() <{level = 10 : i32, message = "nqd,nkd->nqk"}> : () -> ()
    %cst_75 = arith.constant dense<0.000000e+00> : vector<2x8x8xf32>
    %200 = tpu.matmul %195, %197, %cst_75 {dimension_numbers = #tpu.dot_dimension_numbers<[2], [2], [1], [1], [0, 0, 0, 1, 1, 1], [0], [0]>} : vector<2x8x8xf32>, vector<2x8x8xf32>, vector<2x8x8xf32> -> vector<2x8x8xf32>
    "tpu.trace_stop"() : () -> ()
    %201 = vector.shape_cast %200 : vector<2x8x8xf32> to vector<16x8xf32>
    %202 = arith.addf %201, %170 : vector<16x8xf32>
    %cst_76 = arith.constant dense<0xFF800000> : vector<16xf32>
    %203 = vector.multi_reduction <maximumf>, %202, %cst_76 [1] : vector<16x8xf32> to vector<16xf32>
    %204 = vector.shape_cast %203 : vector<16xf32> to vector<16x1xf32>
    %205 = vector.broadcast %204 : vector<16x1xf32> to vector<16x8xf32>
    %206 = arith.subf %202, %205 : vector<16x8xf32>
    %207 = math.exp %206 : vector<16x8xf32>
    %cst_77 = arith.constant dense<0.000000e+00> : vector<16xf32>
    %208 = vector.multi_reduction <add>, %207, %cst_77 [1] : vector<16x8xf32> to vector<16xf32>
    %209 = vector.shape_cast %208 : vector<16xf32> to vector<16x1xf32>
    %210 = vector.broadcast %209 : vector<16x1xf32> to vector<16x8xf32>
    %211 = arith.divf %207, %210 : vector<16x8xf32>
    %212 = vector.shape_cast %211 : vector<16x8xf32> to vector<2x8x8xf32>
    "tpu.trace_start"() <{level = 10 : i32, message = "nqk,nkd->nqd"}> : () -> ()
    %cst_78 = arith.constant dense<0.000000e+00> : vector<2x8x8xf32>
    %213 = tpu.matmul %212, %199, %cst_78 {dimension_numbers = #tpu.dot_dimension_numbers<[2], [1], [1], [2], [0, 0, 0, 1, 1, 2], [0], [0]>} : vector<2x8x8xf32>, vector<2x8x8xf32>, vector<2x8x8xf32> -> vector<2x8x8xf32>
    "tpu.trace_stop"() : () -> ()
    %214 = vector.shape_cast %213 : vector<2x8x8xf32> to vector<16x8xf32>
    %215 = vector.extract_strided_slice %161 {offsets = [0, 16], sizes = [16, 8], strides = [1, 1]} : vector<16x32xf32> to vector<16x8xf32>
    %216 = vector.shape_cast %215 : vector<16x8xf32> to vector<2x8x8xf32>
    %217 = vector.extract_strided_slice %167 {offsets = [0, 16], sizes = [16, 8], strides = [1, 1]} : vector<16x32xf32> to vector<16x8xf32>
    %218 = vector.shape_cast %217 : vector<16x8xf32> to vector<2x8x8xf32>
    %219 = vector.extract_strided_slice %168 {offsets = [0, 16], sizes = [16, 8], strides = [1, 1]} : vector<16x32xf32> to vector<16x8xf32>
    %220 = vector.shape_cast %219 : vector<16x8xf32> to vector<2x8x8xf32>
    "tpu.trace_start"() <{level = 10 : i32, message = "nqd,nkd->nqk"}> : () -> ()
    %cst_79 = arith.constant dense<0.000000e+00> : vector<2x8x8xf32>
    %221 = tpu.matmul %216, %218, %cst_79 {dimension_numbers = #tpu.dot_dimension_numbers<[2], [2], [1], [1], [0, 0, 0, 1, 1, 1], [0], [0]>} : vector<2x8x8xf32>, vector<2x8x8xf32>, vector<2x8x8xf32> -> vector<2x8x8xf32>
    "tpu.trace_stop"() : () -> ()
    %222 = vector.shape_cast %221 : vector<2x8x8xf32> to vector<16x8xf32>
    %223 = arith.addf %222, %170 : vector<16x8xf32>
    %cst_80 = arith.constant dense<0xFF800000> : vector<16xf32>
    %224 = vector.multi_reduction <maximumf>, %223, %cst_80 [1] : vector<16x8xf32> to vector<16xf32>
    %225 = vector.shape_cast %224 : vector<16xf32> to vector<16x1xf32>
    %226 = vector.broadcast %225 : vector<16x1xf32> to vector<16x8xf32>
    %227 = arith.subf %223, %226 : vector<16x8xf32>
    %228 = math.exp %227 : vector<16x8xf32>
    %cst_81 = arith.constant dense<0.000000e+00> : vector<16xf32>
    %229 = vector.multi_reduction <add>, %228, %cst_81 [1] : vector<16x8xf32> to vector<16xf32>
    %230 = vector.shape_cast %229 : vector<16xf32> to vector<16x1xf32>
    %231 = vector.broadcast %230 : vector<16x1xf32> to vector<16x8xf32>
    %232 = arith.divf %228, %231 : vector<16x8xf32>
    %233 = vector.shape_cast %232 : vector<16x8xf32> to vector<2x8x8xf32>
    "tpu.trace_start"() <{level = 10 : i32, message = "nqk,nkd->nqd"}> : () -> ()
    %cst_82 = arith.constant dense<0.000000e+00> : vector<2x8x8xf32>
    %234 = tpu.matmul %233, %220, %cst_82 {dimension_numbers = #tpu.dot_dimension_numbers<[2], [1], [1], [2], [0, 0, 0, 1, 1, 2], [0], [0]>} : vector<2x8x8xf32>, vector<2x8x8xf32>, vector<2x8x8xf32> -> vector<2x8x8xf32>
    "tpu.trace_stop"() : () -> ()
    %235 = vector.shape_cast %234 : vector<2x8x8xf32> to vector<16x8xf32>
    %236 = vector.extract_strided_slice %161 {offsets = [0, 24], sizes = [16, 8], strides = [1, 1]} : vector<16x32xf32> to vector<16x8xf32>
    %237 = vector.shape_cast %236 : vector<16x8xf32> to vector<2x8x8xf32>
    %238 = vector.extract_strided_slice %167 {offsets = [0, 24], sizes = [16, 8], strides = [1, 1]} : vector<16x32xf32> to vector<16x8xf32>
    %239 = vector.shape_cast %238 : vector<16x8xf32> to vector<2x8x8xf32>
    %240 = vector.extract_strided_slice %168 {offsets = [0, 24], sizes = [16, 8], strides = [1, 1]} : vector<16x32xf32> to vector<16x8xf32>
    %241 = vector.shape_cast %240 : vector<16x8xf32> to vector<2x8x8xf32>
    "tpu.trace_start"() <{level = 10 : i32, message = "nqd,nkd->nqk"}> : () -> ()
    %cst_83 = arith.constant dense<0.000000e+00> : vector<2x8x8xf32>
    %242 = tpu.matmul %237, %239, %cst_83 {dimension_numbers = #tpu.dot_dimension_numbers<[2], [2], [1], [1], [0, 0, 0, 1, 1, 1], [0], [0]>} : vector<2x8x8xf32>, vector<2x8x8xf32>, vector<2x8x8xf32> -> vector<2x8x8xf32>
    "tpu.trace_stop"() : () -> ()
    %243 = vector.shape_cast %242 : vector<2x8x8xf32> to vector<16x8xf32>
    %244 = arith.addf %243, %170 : vector<16x8xf32>
    %cst_84 = arith.constant dense<0xFF800000> : vector<16xf32>
    %245 = vector.multi_reduction <maximumf>, %244, %cst_84 [1] : vector<16x8xf32> to vector<16xf32>
    %246 = vector.shape_cast %245 : vector<16xf32> to vector<16x1xf32>
    %247 = vector.broadcast %246 : vector<16x1xf32> to vector<16x8xf32>
    %248 = arith.subf %244, %247 : vector<16x8xf32>
    %249 = math.exp %248 : vector<16x8xf32>
    %cst_85 = arith.constant dense<0.000000e+00> : vector<16xf32>
    %250 = vector.multi_reduction <add>, %249, %cst_85 [1] : vector<16x8xf32> to vector<16xf32>
    %251 = vector.shape_cast %250 : vector<16xf32> to vector<16x1xf32>
    %252 = vector.broadcast %251 : vector<16x1xf32> to vector<16x8xf32>
    %253 = arith.divf %249, %252 : vector<16x8xf32>
    %254 = vector.shape_cast %253 : vector<16x8xf32> to vector<2x8x8xf32>
    "tpu.trace_start"() <{level = 10 : i32, message = "nqk,nkd->nqd"}> : () -> ()
    %cst_86 = arith.constant dense<0.000000e+00> : vector<2x8x8xf32>
    %255 = tpu.matmul %254, %241, %cst_86 {dimension_numbers = #tpu.dot_dimension_numbers<[2], [1], [1], [2], [0, 0, 0, 1, 1, 2], [0], [0]>} : vector<2x8x8xf32>, vector<2x8x8xf32>, vector<2x8x8xf32> -> vector<2x8x8xf32>
    "tpu.trace_stop"() : () -> ()
    %256 = vector.shape_cast %255 : vector<2x8x8xf32> to vector<16x8xf32>
    %257 = tpu.concatenate %193, %214, %235, %256 in 1 : vector<16x8xf32>, vector<16x8xf32>, vector<16x8xf32>, vector<16x8xf32> -> vector<16x32xf32>
    %cst_87 = arith.constant dense<0.000000e+00> : vector<16x32xf32>
    %258 = tpu.matmul %257, %171, %cst_87 {dimension_numbers = #tpu.dot_dimension_numbers<[1], [0], [0], [1], [0, 0, 1, 1], [], []>} : vector<16x32xf32>, vector<32x32xf32>, vector<16x32xf32> -> vector<16x32xf32>
    %259 = vector.broadcast %172 : vector<1x32xf32> to vector<16x32xf32>
    %260 = arith.addf %258, %259 : vector<16x32xf32>
    %261 = arith.addf %156, %260 : vector<16x32xf32>
    %cst_88 = arith.constant dense<0.000000e+00> : vector<16xf32>
    %262 = vector.multi_reduction <add>, %261, %cst_88 [1] : vector<16x32xf32> to vector<16xf32>
    %263 = vector.shape_cast %262 : vector<16xf32> to vector<16x1xf32>
    %cst_89 = arith.constant 3.200000e+01 : f32
    %264 = vector.broadcast %cst_89 : f32 to vector<16x1xf32>
    %265 = arith.divf %263, %264 : vector<16x1xf32>
    %266 = vector.broadcast %265 : vector<16x1xf32> to vector<16x32xf32>
    %267 = arith.subf %261, %266 : vector<16x32xf32>
    %268 = arith.mulf %267, %267 : vector<16x32xf32>
    %cst_90 = arith.constant dense<0.000000e+00> : vector<16xf32>
    %269 = vector.multi_reduction <add>, %268, %cst_90 [1] : vector<16x32xf32> to vector<16xf32>
    %270 = vector.shape_cast %269 : vector<16xf32> to vector<16x1xf32>
    %cst_91 = arith.constant 3.200000e+01 : f32
    %271 = vector.broadcast %cst_91 : f32 to vector<16x1xf32>
    %272 = arith.divf %270, %271 : vector<16x1xf32>
    %273 = vector.broadcast %265 : vector<16x1xf32> to vector<16x32xf32>
    %274 = arith.subf %261, %273 : vector<16x32xf32>
    %cst_92 = arith.constant 9.99999974E-6 : f32
    %275 = vector.broadcast %cst_92 : f32 to vector<16x1xf32>
    %276 = arith.addf %272, %275 : vector<16x1xf32>
    %277 = math.rsqrt %276 : vector<16x1xf32>
    %278 = vector.broadcast %277 : vector<16x1xf32> to vector<16x32xf32>
    %279 = arith.mulf %274, %278 : vector<16x32xf32>
    %c2 = arith.constant 2 : index
    %c0_93 = arith.constant 0 : index
    %c0_94 = arith.constant 0 : index
    %280 = vector.load %arg4[%c2, %c0_93, %c0_94] : memref<3x1x32xf32, #tpu.memory_space<vmem>>, vector<1x1x32xf32>
    %281 = vector.shape_cast %280 : vector<1x1x32xf32> to vector<1x32xf32>
    %282 = vector.broadcast %281 : vector<1x32xf32> to vector<16x32xf32>
    %283 = arith.mulf %279, %282 : vector<16x32xf32>
    %c2_95 = arith.constant 2 : index
    %c0_96 = arith.constant 0 : index
    %c0_97 = arith.constant 0 : index
    %284 = vector.load %arg5[%c2_95, %c0_96, %c0_97] : memref<3x1x32xf32, #tpu.memory_space<vmem>>, vector<1x1x32xf32>
    %285 = vector.shape_cast %284 : vector<1x1x32xf32> to vector<1x32xf32>
    %286 = vector.broadcast %285 : vector<1x32xf32> to vector<16x32xf32>
    %287 = arith.addf %283, %286 : vector<16x32xf32>
    %c0_98 = arith.constant 0 : index
    %c0_99 = arith.constant 0 : index
    %288 = vector.load %arg16[%c0_98, %c0_99] : memref<32x64xf32, #tpu.memory_space<vmem>>, vector<32x64xf32>
    %cst_100 = arith.constant dense<0.000000e+00> : vector<16x64xf32>
    %289 = tpu.matmul %287, %288, %cst_100 {dimension_numbers = #tpu.dot_dimension_numbers<[1], [0], [0], [1], [0, 0, 1, 1], [], []>} : vector<16x32xf32>, vector<32x64xf32>, vector<16x64xf32> -> vector<16x64xf32>
    %c0_101 = arith.constant 0 : index
    %c0_102 = arith.constant 0 : index
    %290 = vector.load %arg17[%c0_101, %c0_102] : memref<1x64xf32, #tpu.memory_space<vmem>>, vector<1x64xf32>
    %291 = vector.broadcast %290 : vector<1x64xf32> to vector<16x64xf32>
    %292 = arith.addf %289, %291 : vector<16x64xf32>
    %cst_103 = arith.constant 0.000000e+00 : f32
    %293 = vector.broadcast %cst_103 : f32 to vector<16x64xf32>
    %294 = arith.maximumf %292, %293 : vector<16x64xf32>
    %c0_104 = arith.constant 0 : index
    %c0_105 = arith.constant 0 : index
    %295 = vector.load %arg18[%c0_104, %c0_105] : memref<64x32xf32, #tpu.memory_space<vmem>>, vector<64x32xf32>
    %cst_106 = arith.constant dense<0.000000e+00> : vector<16x32xf32>
    %296 = tpu.matmul %294, %295, %cst_106 {dimension_numbers = #tpu.dot_dimension_numbers<[1], [0], [0], [1], [0, 0, 1, 1], [], []>} : vector<16x64xf32>, vector<64x32xf32>, vector<16x32xf32> -> vector<16x32xf32>
    %c0_107 = arith.constant 0 : index
    %c0_108 = arith.constant 0 : index
    %297 = vector.load %arg19[%c0_107, %c0_108] : memref<1x32xf32, #tpu.memory_space<vmem>>, vector<1x32xf32>
    %298 = vector.broadcast %297 : vector<1x32xf32> to vector<16x32xf32>
    %299 = arith.addf %296, %298 : vector<16x32xf32>
    %300 = arith.addf %287, %299 : vector<16x32xf32>
    %301 = vector.shape_cast %300 : vector<16x32xf32> to vector<2x8x32xf32>
    %c0_109 = arith.constant 0 : index
    %c0_110 = arith.constant 0 : index
    %c0_111 = arith.constant 0 : index
    %302 = vector.load %arg20[%c0_109, %c0_110, %c0_111] : memref<2x8x32xf32, #tpu.memory_space<vmem>>, vector<2x8x32xf32>
    tpu.vector_store %arg20[%c0_109, %c0_110, %c0_111], %301 {strides = array<i32>} : memref<2x8x32xf32, #tpu.memory_space<vmem>>, vector<2x8x32xf32>,
    return
  }
}

</mosaic_0001>

<bundles_post_ra>
// kernel: decoder_layer.1
= control target key start
LH: loop header
LB: loop body
LE: loop exit
PB: predicated region body
PF: predicated region fallthrough
CT: control target
= control target key end

     0   :  { %s5570_s0 = inlined_call_operand.hbm [shape: f32[2,8,32], index: 0, kind: input, shape index: {}]   ;;  %s5571_s1 = inlined_call_operand.hbm [shape: f32[2,8,32], index: 1, kind: input, shape index: {}]   ;;  %s5572_s2 = inlined_call_operand.hbm [shape: f32[2,8,8], index: 2, kind: input, shape index: {}]   ;;  %s5573_s3 = inlined_call_operand.hbm [shape: f32[2,8,8], index: 3, kind: input, shape index: {}]   ;;  %s5574_s4 = inlined_call_operand.hbm [shape: f32[3,1,32], index: 4, kind: input, shape index: {}]   ;;  %s5575_s5 = inlined_call_operand.hbm [shape: f32[3,1,32], index: 5, kind: input, shape index: {}]   ;;  %s5576_s6 = inlined_call_operand.vmem [shape: f32[32,96], index: 6, kind: input, shape index: {}]   ;;  %s5577_s7 = inlined_call_operand.hbm [shape: f32[1,96], index: 7, kind: input, shape index: {}]   ;;  %s5578_s8 = inlined_call_operand.vmem [shape: f32[32,32], index: 8, kind: input, shape index: {}]   ;;  %s5579_s9 = inlined_call_operand.hbm [shape: f32[1,32], index: 9, kind: input, shape index: {}]   ;;  %s5580_s10 = inlined_call_operand.vmem [shape: f32[32,32], index: 10, kind: input, shape index: {}]   ;;  %s5581_s11 = inlined_call_operand.hbm [shape: f32[1,32], index: 11, kind: input, shape index: {}]   ;;  %s5582_s12 = inlined_call_operand.vmem [shape: f32[32,64], index: 12, kind: input, shape index: {}]   ;;  %s5583_s13 = inlined_call_operand.hbm [shape: f32[1,64], index: 13, kind: input, shape index: {}]   ;;  %s5584_s14 = inlined_call_operand.hbm [shape: f32[32,32], index: 14, kind: input, shape index: {}]   ;;  %s5585_s15 = inlined_call_operand.hbm [shape: f32[1,32], index: 15, kind: input, shape index: {}]   ;;  %s5586_s16 = inlined_call_operand.hbm [shape: f32[32,64], index: 16, kind: input, shape index: {}]   ;;  %s5587_s17 = inlined_call_operand.hbm [shape: f32[1,64], index: 17, kind: input, shape index: {}]   ;;  %s5588_s18 = inlined_call_operand.vmem [shape: f32[64,32], index: 18, kind: input, shape index: {}]   ;;  %s5589_s19 = inlined_call_operand.vmem [shape: f32[1,32], index: 19, kind: input, shape index: {}]   ;;  %s5590_s20 = inlined_call_operand.hbm [shape: f32[2,8,32], index: 20, kind: output, shape index: {}]  }
   0x1   :  { %5597 = sst [smem:[#allocation35_spill]] %s5570_s0 }
   0x2   :  { %5598 = sst [smem:[#allocation36_spill]] %s5571_s1 }
   0x3   :  { %5599 = sst [smem:[#allocation37_spill]] %s5572_s2 }
   0x4   :  { %5600 = sst [smem:[#allocation38_spill]] %s5573_s3 }
   0x5   :  { %5601 = sst [smem:[#allocation39_spill]] %s5574_s4 }
   0x6   :  { %5602 = sst [smem:[#allocation40_spill]] %s5589_s19 }
   0x7   :  { %5603 = sst [smem:[#allocation41_spill]] %s5590_s20 }
   0x8   :  { %25 = vsyncpa [#allocation3], 0 }
   0x9   :  { %26 = vsyncpa [#allocation6], 0 }
   0xa   :  { %27 = vsyncpa [#allocation9], 0 }
   0xb   :  { %28 = vsyncpa [#allocation12], 0 }
   0xc   :  { %29 = vsyncpa [#allocation15], 0 }
   0xd   :  { %30 = vsyncpa [#allocation18], 0 }
   0xe   :  { %31 = vsyncpa [#allocation21], 0 }
   0xf   :  { %32 = vsyncpa [#allocation24], 0 }
  0x10   :  { %33 = vsyncpa [#allocation4], 0  ;;  %s4737_s1 = smov [#allocation5]   ;;  %s4738_s23 = smov [#allocation8]  }
  0x11   :  { %s51_s22 = sshll.u32 %s4737_s1, 4  ;;  %s75_s24 = sshll.u32 %s4738_s23, 4  ;;  %s52_s22 = int_to_ptr.vmem [resolvable:$true] %s51_s22  ;;  %s4875_s24 = int_to_ptr.vmem [resolvable:$true] %s75_s24 }
  0x12   :  { %s5604_s3 = sld [smem:[#allocation36_spill]] }
  0x18   :  { %s4389_s26 = scalar_lea.hbm %s5604_s3, 256 }
  0x19   :  { %p4390_p0 = scmp.ne.s32.totalorder %s5604_s3, %s4389_s26  ;;  %p4393_p1 = scmp.lt.u32.totalorder %s4389_s26, %s5604_s3 }
  0x1b   :  { %p4395_p2 = pnand %p4393_p1, %p4390_p0 }
  0x1d   :  { %4398 = shalt.err (!%p4395_p2)
}
  0x1e   :  { %s4399_s30 = scalar_lea.vmem %s52_s22, 256  ;;  %p4404_p4 = scmp.lt.s32.totalorder %s52_s22, %s52_s22 }
  0x1f   :  { %p4400_p3 = scmp.ne.s32.totalorder %s52_s22, %s4399_s30  ;;  %p4405_p5 = scmp.lt.s32.totalorder %s4399_s30, %s4399_s30 }
  0x21   :  { %p4406_p6 = por %p4405_p5, %p4404_p4 }
  0x23   :  { %p4407_p7 = pnand %p4406_p6, %p4400_p3 }
  0x25   :  { %4410 = shalt.err (!%p4407_p7)
}
  0x26   :  { %s4739_s0 = smov 128   ;;  %s4740_s21 = smov 8  }
  0x27   :  { %57 = dma.hbm_to_vmem [thread:$0]  %s5604_s3, 256, %s52_s22, [#allocation6], %s4739_s0, %s4739_s0, %s4740_s21  }
  0x28   :  { %s5605_s26 = sld [smem:[#allocation38_spill]] }
  0x2e   :  { %s4411_s27 = scalar_lea.hbm %s5605_s26, 256 }
  0x2f   :  { %p4412_p8 = scmp.ne.s32.totalorder %s5605_s26, %s4411_s27  ;;  %p4415_p9 = scmp.lt.u32.totalorder %s4411_s27, %s5605_s26 }
  0x31   :  { %p4417_p10 = pnand %p4415_p9, %p4412_p8 }
  0x33   :  { %4420 = shalt.err (!%p4417_p10)
}
  0x34   :  { %s4421_s20 = scalar_lea.vmem %s4875_s24, 256  ;;  %p4426_p12 = scmp.lt.s32.totalorder %s4875_s24, %s4875_s24 }
  0x35   :  { %p4422_p11 = scmp.ne.s32.totalorder %s4875_s24, %s4421_s20  ;;  %p4427_p13 = scmp.lt.s32.totalorder %s4421_s20, %s4421_s20 }
  0x37   :  { %p4428_p0 = por %p4427_p13, %p4426_p12 }
  0x39   :  { %p4429_p1 = pnand %p4428_p0, %p4422_p11 }
  0x3b   :  { %4432 = shalt.err (!%p4429_p1)
}
  0x3c   :  { %81 = dma.hbm_to_vmem [thread:$0]  %s5605_s26, 256, %s4875_s24, [#allocation9], %s4739_s0, %s4739_s0, %s4740_s21  }
  0x3d   :  { %s4741_s1 = smov [#allocation11]   ;;  %s4742_s2 = smov [#allocation14]  }
  0x3e   :  { %s99_s23 = sshll.u32 %s4741_s1, 4  ;;  %s126_s25 = sshll.u32 %s4742_s2, 4  ;;  %s100_s23 = int_to_ptr.vmem [resolvable:$true] %s99_s23  ;;  %s4912_s25 = int_to_ptr.vmem [resolvable:$true] %s126_s25 }
  0x3f   :  { %s4433_s28 = scalar_lea.hbm %s5575_s5, 48 }
  0x40   :  { %p4434_p2 = scmp.ne.s32.totalorder %s5575_s5, %s4433_s28  ;;  %p4437_p3 = scmp.lt.u32.totalorder %s4433_s28, %s5575_s5 }
  0x42   :  { %p4439_p4 = pnand %p4437_p3, %p4434_p2 }
  0x44   :  { %4442 = shalt.err (!%p4439_p4)
}
  0x45   :  { %s4443_s24 = scalar_lea.vmem %s100_s23, 48  ;;  %s4447_s26 = scalar_lea.vmem %s100_s23, 64 }
  0x46   :  { %p4444_p5 = scmp.ne.s32.totalorder %s100_s23, %s4443_s24  ;;  %p4448_p6 = scmp.lt.s32.totalorder %s100_s23, %s100_s23 }
  0x47   :  { %p4449_p7 = scmp.lt.s32.totalorder %s4447_s26, %s4443_s24 }
  0x49   :  { %p4450_p8 = por %p4449_p7, %p4448_p6 }
  0x4b   :  { %p4451_p9 = pnand %p4450_p8, %p4444_p5 }
  0x4d   :  { %4454 = shalt.err (!%p4451_p9)
}
  0x4e   :  { %s4743_s22 = smov 16   ;;  %s4744_s3 = smov 1  }
  0x4f   :  { %105 = dma.hbm_to_vmem [thread:$0]  %s5575_s5, 48, %s100_s23, [#allocation12], %s4743_s22, %s4743_s22, %s4744_s3  }
  0x50   :  { %s4455_s20 = scalar_lea.hbm %s5579_s9, 16 }
  0x51   :  { %p4456_p10 = scmp.ne.s32.totalorder %s5579_s9, %s4455_s20  ;;  %p4459_p11 = scmp.lt.u32.totalorder %s4455_s20, %s5579_s9 }
  0x53   :  { %p4461_p12 = pnand %p4459_p11, %p4456_p10 }
  0x55   :  { %4464 = shalt.err (!%p4461_p12)
}
  0x56   :  { %s4465_s24 = scalar_lea.vmem %s4912_s25, 16  ;;  %s4469_s5 = scalar_lea.vmem %s4912_s25, 32 }
  0x57   :  { %p4466_p13 = scmp.ne.s32.totalorder %s4912_s25, %s4465_s24  ;;  %p4470_p0 = scmp.lt.s32.totalorder %s4912_s25, %s4912_s25 }
  0x58   :  { %p4471_p1 = scmp.lt.s32.totalorder %s4469_s5, %s4465_s24 }
  0x5a   :  { %p4472_p2 = por %p4471_p1, %p4470_p0 }
  0x5c   :  { %p4473_p3 = pnand %p4472_p2, %p4466_p13 }
  0x5e   :  { %4476 = shalt.err (!%p4473_p3)
}
  0x5f   :  { %129 = dma.hbm_to_vmem [thread:$0]  %s5579_s9, 16, %s4912_s25, [#allocation15]  }
  0x60   :  { %s4745_s1 = smov [#allocation17]   ;;  %s4746_s19 = smov [#allocation20]  }
  0x61   :  { %s150_s2 = sshll.u32 %s4745_s1, 4  ;;  %s172_s27 = sshll.u32 %s4746_s19, 4  ;;  %s151_s2 = int_to_ptr.vmem [resolvable:$true] %s150_s2  ;;  %s173_s27 = int_to_ptr.vmem [resolvable:$true] %s172_s27 }
  0x62   :  { %s4477_s4 = scalar_lea.hbm %s5583_s13, 16 }
  0x63   :  { %p4478_p4 = scmp.ne.s32.totalorder %s5583_s13, %s4477_s4  ;;  %p4481_p5 = scmp.lt.u32.totalorder %s4477_s4, %s5583_s13 }
  0x65   :  { %p4483_p6 = pnand %p4481_p5, %p4478_p4 }
  0x67   :  { %4486 = shalt.err (!%p4483_p6)
}
  0x68   :  { %s4487_s9 = scalar_lea.vmem %s151_s2, 16  ;;  %s4491_s25 = scalar_lea.vmem %s151_s2, 32 }
  0x69   :  { %p4488_p7 = scmp.ne.s32.totalorder %s151_s2, %s4487_s9  ;;  %p4492_p8 = scmp.lt.s32.totalorder %s151_s2, %s151_s2 }
  0x6a   :  { %p4493_p9 = scmp.lt.s32.totalorder %s4491_s25, %s4487_s9 }
  0x6c   :  { %p4494_p10 = por %p4493_p9, %p4492_p8 }
  0x6e   :  { %p4495_p11 = pnand %p4494_p10, %p4488_p7 }
  0x70   :  { %4498 = shalt.err (!%p4495_p11)
}
  0x71   :  { %153 = dma.hbm_to_vmem [thread:$0]  %s5583_s13, 16, %s151_s2, [#allocation18]  }
  0x72   :  { %s4499_s20 = scalar_lea.hbm %s5585_s15, 16 }
  0x73   :  { %p4500_p12 = scmp.ne.s32.totalorder %s5585_s15, %s4499_s20  ;;  %p4503_p13 = scmp.lt.u32.totalorder %s4499_s20, %s5585_s15 }
  0x75   :  { %p4505_p0 = pnand %p4503_p13, %p4500_p12 }
  0x77   :  { %4508 = shalt.err (!%p4505_p0)
}
  0x78   :  { %s4509_s24 = scalar_lea.vmem %s173_s27, 16  ;;  %s4513_s5 = scalar_lea.vmem %s173_s27, 32 }
  0x79   :  { %p4510_p1 = scmp.ne.s32.totalorder %s173_s27, %s4509_s24  ;;  %p4514_p2 = scmp.lt.s32.totalorder %s173_s27, %s173_s27 }
  0x7a   :  { %p4515_p3 = scmp.lt.s32.totalorder %s4513_s5, %s4509_s24 }
  0x7c   :  { %p4516_p4 = por %p4515_p3, %p4514_p2 }
  0x7e   :  { %p4517_p5 = pnand %p4516_p4, %p4510_p1 }
  0x80   :  { %4520 = shalt.err (!%p4517_p5)
}
  0x81   :  { %175 = dma.hbm_to_vmem [thread:$0]  %s5585_s15, 16, %s173_s27, [#allocation21]  }
  0x82   :  { %s4747_s9 = smov [#allocation2]   ;;  %s4748_s23 = smov [#allocation7]  }
  0x83   :  { %s39_s25 = sshll.u32 %s4747_s9, 4  ;;  %s63_s26 = sshll.u32 %s4748_s23, 4  ;;  %s40_s25 = int_to_ptr.vmem [resolvable:$true] %s39_s25  ;;  %s4971_s26 = int_to_ptr.vmem [resolvable:$true] %s63_s26 }
  0x84   :  { %s5606_s20 = sld [smem:[#allocation35_spill]] }
  0x8a   :  { %s4521_s28 = scalar_lea.hbm %s5606_s20, 256 }
  0x8b   :  { %p4522_p6 = scmp.ne.s32.totalorder %s5606_s20, %s4521_s28  ;;  %p4525_p7 = scmp.lt.u32.totalorder %s4521_s28, %s5606_s20 }
  0x8d   :  { %p4527_p8 = pnand %p4525_p7, %p4522_p6 }
  0x8f   :  { %4530 = shalt.err (!%p4527_p8)
}
  0x90   :  { %s4531_s15 = scalar_lea.vmem %s40_s25, 256  ;;  %p4536_p10 = scmp.lt.s32.totalorder %s40_s25, %s40_s25 }
  0x91   :  { %p4532_p9 = scmp.ne.s32.totalorder %s40_s25, %s4531_s15  ;;  %p4537_p11 = scmp.lt.s32.totalorder %s4531_s15, %s4531_s15 }
  0x93   :  { %p4538_p12 = por %p4537_p11, %p4536_p10 }
  0x95   :  { %p4539_p13 = pnand %p4538_p12, %p4532_p9 }
  0x97   :  { %4542 = shalt.err (!%p4539_p13)
}
  0x98   :  { %45 = dma.hbm_to_vmem [thread:$0]  %s5606_s20, 256, %s40_s25, [#allocation3], %s4739_s0, %s4739_s0, %s4740_s21  }
  0x99   :  { %s5607_s9 = sld [smem:[#allocation37_spill]] }
  0x9f   :  { %s4543_s23 = scalar_lea.hbm %s5607_s9, 256 }
  0xa0   :  { %p4544_p0 = scmp.ne.s32.totalorder %s5607_s9, %s4543_s23  ;;  %p4547_p1 = scmp.lt.u32.totalorder %s4543_s23, %s5607_s9 }
  0xa2   :  { %p4549_p2 = pnand %p4547_p1, %p4544_p0 }
  0xa4   :  { %4552 = shalt.err (!%p4549_p2)
}
  0xa5   :  { %s4553_s29 = scalar_lea.vmem %s4971_s26, 256  ;;  %p4558_p4 = scmp.lt.s32.totalorder %s4971_s26, %s4971_s26 }
  0xa6   :  { %p4554_p3 = scmp.ne.s32.totalorder %s4971_s26, %s4553_s29  ;;  %p4559_p5 = scmp.lt.s32.totalorder %s4553_s29, %s4553_s29 }
  0xa8   :  { %p4560_p6 = por %p4559_p5, %p4558_p4 }
  0xaa   :  { %p4561_p7 = pnand %p4560_p6, %p4554_p3 }
  0xac   :  { %4564 = shalt.err (!%p4561_p7)
}
  0xad   :  { %69 = dma.hbm_to_vmem [thread:$0]  %s5607_s9, 256, %s4971_s26, [#allocation6], %s4739_s0, %s4739_s0, %s4740_s21  }
  0xae   :  { %s4749_s30 = smov [#allocation10]   ;;  %s4750_s15 = smov [#allocation13]  }
  0xaf   :  { %s87_s24 = sshll.u32 %s4749_s30, 4  ;;  %s114_s27 = sshll.u32 %s4750_s15, 4  ;;  %s88_s24 = int_to_ptr.vmem [resolvable:$true] %s87_s24  ;;  %s115_s27 = int_to_ptr.vmem [resolvable:$true] %s114_s27 }
  0xb0   :  { %s5608_s2 = sld [smem:[#allocation39_spill]] }
  0xb6   :  { %s4565_s23 = scalar_lea.hbm %s5608_s2, 48 }
  0xb7   :  { %p4566_p8 = scmp.ne.s32.totalorder %s5608_s2, %s4565_s23  ;;  %p4569_p9 = scmp.lt.u32.totalorder %s4565_s23, %s5608_s2 }
  0xb9   :  { %p4571_p10 = pnand %p4569_p9, %p4566_p8 }
  0xbb   :  { %4574 = shalt.err (!%p4571_p10)
}
  0xbc   :  { %s4575_s26 = scalar_lea.vmem %s88_s24, 48  ;;  %s4579_s9 = scalar_lea.vmem %s88_s24, 64 }
  0xbd   :  { %p4576_p11 = scmp.ne.s32.totalorder %s88_s24, %s4575_s26  ;;  %p4580_p12 = scmp.lt.s32.totalorder %s88_s24, %s88_s24 }
  0xbe   :  { %p4581_p13 = scmp.lt.s32.totalorder %s4579_s9, %s4575_s26 }
  0xc0   :  { %p4582_p0 = por %p4581_p13, %p4580_p12 }
  0xc2   :  { %p4583_p1 = pnand %p4582_p0, %p4576_p11 }
  0xc4   :  { %4586 = shalt.err (!%p4583_p1)
}
  0xc5   :  { %93 = dma.hbm_to_vmem [thread:$0]  %s5608_s2, 48, %s88_s24, [#allocation9], %s4743_s22, %s4743_s22, %s4744_s3  }
  0xc6   :  { %s4587_s15 = scalar_lea.hbm %s5577_s7, 16 }
  0xc7   :  { %p4588_p2 = scmp.ne.s32.totalorder %s5577_s7, %s4587_s15  ;;  %p4591_p3 = scmp.lt.u32.totalorder %s4587_s15, %s5577_s7 }
  0xc9   :  { %p4593_p4 = pnand %p4591_p3, %p4588_p2 }
  0xcb   :  { %4596 = shalt.err (!%p4593_p4)
}
  0xcc   :  { %s4597_s19 = scalar_lea.vmem %s115_s27, 16  ;;  %s4601_s28 = scalar_lea.vmem %s115_s27, 32 }
  0xcd   :  { %p4598_p5 = scmp.ne.s32.totalorder %s115_s27, %s4597_s19  ;;  %p4602_p6 = scmp.lt.s32.totalorder %s115_s27, %s115_s27 }
  0xce   :  { %p4603_p7 = scmp.lt.s32.totalorder %s4601_s28, %s4597_s19 }
  0xd0   :  { %p4604_p8 = por %p4603_p7, %p4602_p6 }
  0xd2   :  { %p4605_p9 = pnand %p4604_p8, %p4598_p5 }
  0xd4   :  { %4608 = shalt.err (!%p4605_p9)
}
  0xd5   :  { %117 = dma.hbm_to_vmem [thread:$0]  %s5577_s7, 16, %s115_s27, [#allocation12]  }
  0xd6   :  { %s4751_s2 = smov [#allocation16]   ;;  %s4752_s26 = smov [#allocation19]  }
  0xd7   :  { %s138_s4 = sshll.u32 %s4751_s2, 4  ;;  %s159_s9 = sshll.u32 %s4752_s26, 4  ;;  %s139_s4 = int_to_ptr.vmem [resolvable:$true] %s138_s4  ;;  %s5035_s9 = int_to_ptr.vmem [resolvable:$true] %s159_s9 }
  0xd8   :  { %s4609_s20 = scalar_lea.hbm %s5581_s11, 16 }
  0xd9   :  { %p4610_p10 = scmp.ne.s32.totalorder %s5581_s11, %s4609_s20  ;;  %p4613_p11 = scmp.lt.u32.totalorder %s4609_s20, %s5581_s11 }
  0xdb   :  { %p4615_p12 = pnand %p4613_p11, %p4610_p10 }
  0xdd   :  { %4618 = shalt.err (!%p4615_p12)
}
  0xde   :  { %s4619_s7 = scalar_lea.vmem %s139_s4, 16  ;;  %s4623_s27 = scalar_lea.vmem %s139_s4, 32 }
  0xdf   :  { %p4620_p13 = scmp.ne.s32.totalorder %s139_s4, %s4619_s7  ;;  %p4624_p0 = scmp.lt.s32.totalorder %s139_s4, %s139_s4 }
  0xe0   :  { %p4625_p1 = scmp.lt.s32.totalorder %s4623_s27, %s4619_s7 }
  0xe2   :  { %p4626_p2 = por %p4625_p1, %p4624_p0 }
  0xe4   :  { %p4627_p3 = pnand %p4626_p2, %p4620_p13 }
  0xe6   :  { %4630 = shalt.err (!%p4627_p3)
}
  0xe7   :  { %141 = dma.hbm_to_vmem [thread:$0]  %s5581_s11, 16, %s139_s4, [#allocation15]  }
  0xe8   :  { %s4631_s3 = scalar_lea.hbm %s5584_s14, 512 }
  0xe9   :  { %p4632_p4 = scmp.ne.s32.totalorder %s5584_s14, %s4631_s3  ;;  %p4635_p5 = scmp.lt.u32.totalorder %s4631_s3, %s5584_s14 }
  0xeb   :  { %p4637_p6 = pnand %p4635_p5, %p4632_p4 }
  0xed   :  { %4640 = shalt.err (!%p4637_p6)
}
  0xee   :  { %s4641_s25 = scalar_lea.vmem %s5035_s9, 512  ;;  %p4646_p8 = scmp.lt.s32.totalorder %s5035_s9, %s5035_s9 }
  0xef   :  { %p4642_p7 = scmp.ne.s32.totalorder %s5035_s9, %s4641_s25  ;;  %p4647_p9 = scmp.lt.s32.totalorder %s4641_s25, %s4641_s25 }
  0xf1   :  { %p4648_p10 = por %p4647_p9, %p4646_p8 }
  0xf3   :  { %p4649_p11 = pnand %p4648_p10, %p4642_p7 }
  0xf5   :  { %4652 = shalt.err (!%p4649_p11)
}
  0xf6   :  { %165 = dma.hbm_to_vmem [thread:$0]  %s5584_s14, 512, %s5035_s9, [#allocation18], %s4739_s0, %s4739_s0, %s4740_s21  }
  0xf7   :  { %s4753_s20 = smov [#allocation22]   ;;  %s4754_s15 = smov [#allocation23]  }
  0xf8   :  { %s181_s30 = sshll.u32 %s4753_s20, 4  ;;  %s194_s5 = sshll.u32 %s4754_s15, 4  ;;  %s182_s30 = int_to_ptr.vmem [resolvable:$true] %s181_s30  ;;  %s195_s5 = int_to_ptr.vmem [resolvable:$true] %s194_s5 }
  0xf9   :  { %s4653_s27 = scalar_lea.hbm %s5586_s16, 512 }
  0xfa   :  { %p4654_p12 = scmp.ne.s32.totalorder %s5586_s16, %s4653_s27  ;;  %p4657_p13 = scmp.lt.u32.totalorder %s4653_s27, %s5586_s16 }
  0xfc   :  { %p4659_p0 = pnand %p4657_p13, %p4654_p12 }
  0xfe   :  { %4662 = shalt.err (!%p4659_p0)
}
  0xff   :  { %s4663_s14 = scalar_lea.vmem %s182_s30, 512  ;;  %p4668_p2 = scmp.lt.s32.totalorder %s182_s30, %s182_s30 }
 0x100   :  { %p4664_p1 = scmp.ne.s32.totalorder %s182_s30, %s4663_s14  ;;  %p4669_p3 = scmp.lt.s32.totalorder %s4663_s14, %s4663_s14 }
 0x102   :  { %p4670_p4 = por %p4669_p3, %p4668_p2 }
 0x104   :  { %p4671_p5 = pnand %p4670_p4, %p4664_p1 }
 0x106   :  { %4674 = shalt.err (!%p4671_p5)
}
 0x107   :  { %187 = dma.hbm_to_vmem [thread:$0]  %s5586_s16, 512, %s182_s30, [#allocation21], %s4739_s0, %s4739_s0, %s4740_s21  }
 0x108   :  { %s4675_s26 = scalar_lea.hbm %s5587_s17, 16 }
 0x109   :  { %p4676_p6 = scmp.ne.s32.totalorder %s5587_s17, %s4675_s26  ;;  %p4679_p7 = scmp.lt.u32.totalorder %s4675_s26, %s5587_s17 }
 0x10b   :  { %p4681_p8 = pnand %p4679_p7, %p4676_p6 }
 0x10d   :  { %4684 = shalt.err (!%p4681_p8)
}
 0x10e   :  { %s4685_s20 = scalar_lea.vmem %s195_s5, 16  ;;  %s4689_s15 = scalar_lea.vmem %s195_s5, 32 }
 0x10f   :  { %p4686_p9 = scmp.ne.s32.totalorder %s195_s5, %s4685_s20  ;;  %p4690_p10 = scmp.lt.s32.totalorder %s195_s5, %s195_s5 }
 0x110   :  { %p4691_p11 = scmp.lt.s32.totalorder %s4689_s15, %s4685_s20 }
 0x112   :  { %p4692_p12 = por %p4691_p11, %p4690_p10 }
 0x114   :  { %p4693_p13 = pnand %p4692_p12, %p4686_p9 }
 0x116   :  { %4696 = shalt.err (!%p4693_p13)
}
 0x117   :  { %197 = dma.hbm_to_vmem [thread:$0]  %s5587_s17, 16, %s195_s5, [#allocation24]  }
 0x118   :  { %4719 = dma.done.wait [#allocation3], 256  }
 0x119   :  { %4720 = vsyncadd [#allocation3], 4294967040 }
 0x11a   :  { %4721 = dma.done.wait [#allocation6], 512  }
 0x11b   :  { %4722 = vsyncadd [#allocation6], 4294966784 }
 0x11c   :  { %4723 = dma.done.wait [#allocation9], 304  }
 0x11d   :  { %4724 = vsyncadd [#allocation9], 4294966992 }
 0x11e   :  { %4725 = dma.done.wait [#allocation12], 64  }
 0x11f   :  { %4726 = vsyncadd [#allocation12], 4294967232 }
 0x120   :  { %4727 = dma.done.wait [#allocation15], 32  }
 0x121   :  { %4728 = vsyncadd [#allocation15], 4294967264 }
 0x122   :  { %4729 = dma.done.wait [#allocation18], 528  }
 0x123   :  { %4730 = vsyncadd [#allocation18], 4294966768 }
 0x124   :  { %4731 = dma.done.wait [#allocation21], 528  }
 0x125   :  { %4732 = vsyncadd [#allocation21], 4294966768 }
 0x126   :  { %4733 = dma.done.wait [#allocation24], 16  }
 0x127   :  { %4734 = vsyncadd [#allocation24], 4294967280  ;;  %vm248_vm0 = vcmask 261120   ;;  %v244_v0 = vld [vmem:[#allocation2] sm:$0xff]  ;;  %v245_v1 = vld [vmem:[#allocation2 + $0x8] sm:$0xff]  ;;  %v4755_v36 = vmov 0.0  }
 0x128   :  { %v249_v2 = vsel %vm248_vm0, %v244_v0, 0.0  ;;  %v252_v3 = vsel %vm248_vm0, %v245_v1, 0.0  ;;  %v294_v14 = vld [vmem:[%s5576_s6] sm:$0xff]  ;;  %v295_v15 = vld [vmem:[%s5576_s6 + $0x8] sm:$0xff]  ;;  %v296_v16 = vld [vmem:[%s5576_s6 + $0x10] sm:$0xff]  ;;  %3992 = vmatprep.subr.mxu0 %v4755_v36  ;;  %vm4756_vm1 = vmmov 0  }
 0x129   :  { %250 = vadd.xlane.f32.xlu0 %v249_v2  ;;  %v4216_v17 = vpack.c.bf16 %v295_v15, %v294_v14  ;;  %v297_v18 = vld [vmem:[%s5576_s6 + $0x18] sm:$0xff]  ;;  %v3786_v27 = vld [vmem:[#allocation10] ss:$0 sm:$0xff]  ;;  %v3787_v29 = vld [vmem:[#allocation11] ss:$0 sm:$0xff]  ;;  %3994 = vmatprep.mubr.msk.f32.mxu0 %vm4756_vm1, %v4755_v36  ;;  %s4757_s6 = smov 96  }
 0x12a   :  { %v4220_v19 = vpack.c.bf16 %v297_v18, %v296_v16  ;;  %v3788_v37 = vld [vmem:[#allocation13] ss:$0 sm:$0xff]  ;;  %vm396_vm2 = vcmask 64512   ;;  %v5146_v44 = vld [vmem:[#allocation7] sm:$0xff]  ;;  %s4758_s28 = smov 64   ;;  %s4759_s14 = smov 88  }
 0x12b   :  { %4217 = vmatprep.subr.bf16.mxu1 %v4216_v17  ;;  %v5149_v48 = vld [vmem:[#allocation7 + $0x8] sm:$0xff]  ;;  %s4760_s9 = smov 120   ;;  %s4761_s3 = smov 56   ;;  %vm1749_vm3 = vcmask 195584   ;;  %vm1746_vm4 = vcmask 130048   ;;  %vm3676_vm5 = vcmask 523264  }
 0x12c   :  { %4219 = vmatpush3.bf16.msra.mxu1 %v4216_v17  ;;  %s4762_s24 = smov 80   ;;  %s4763_s2 = smov 112  }
 0x12d   :  { %253 = vadd.xlane.f32.xlu0 %v252_v3  ;;  %4221 = vmatprep.subr.bf16.mxu1 %v4220_v19  ;;  %s4764_s26 = smov 48   ;;  %s4765_s29 = smov 72  }
 0x12e   :  { %s4766_s25 = smov 104   ;;  %s4767_s11 = smov 40  }
 0x12f   :  { %s4768_s7 = smov 24  }
 0x130   :  { %4223 = vmatpush3.bf16.msra.mxu1 %v4220_v19 }
 0x131   :  { %3982 = vmatprep.subr.mxu1 %v4755_v36 }
 0x1b6   :  { %v251_v4 = vpop.xlane.xlu0 %250 }
 0x1b7   :  { %v256_v5 = vmul.f32 0.03125, %v251_v4 }
 0x1b9   :  { %v258_v6 = vsub.f32 %v244_v0, %v256_v5 }
 0x1ba   :  { %v254_v7 = vpop.xlane.xlu0 %253 }
 0x1bb   :  { %v257_v8 = vmul.f32 0.03125, %v254_v7  ;;  %v260_v9 = vmul.f32 %v258_v6, %v258_v6 }
 0x1bd   :  { %v259_v10 = vsub.f32 %v245_v1, %v257_v8  ;;  %v262_v11 = vsel %vm248_vm0, %v260_v9, 0.0 }
 0x1be   :  { %263 = vadd.xlane.f32.xlu1 %v262_v11 }
 0x1bf   :  { %v261_v12 = vmul.f32 %v259_v10, %v259_v10 }
 0x1c1   :  { %v265_v13 = vsel %vm248_vm0, %v261_v12, 0.0 }
 0x1c2   :  { %266 = vadd.xlane.f32.xlu1 %v265_v13 }
 0x24b   :  { %v264_v20 = vpop.xlane.xlu1 %263 }
 0x24c   :  { %v268_v21 = vmul.f32 0.03125, %v264_v20 }
 0x24e   :  { %v270_v22 = vadd.f32 1e-05, %v268_v21 }
 0x24f   :  { %v267_v23 = vpop.xlane.xlu1 %266 }
 0x250   :  { %4313 = vrsqrt.f32 %v270_v22  ;;  %v269_v24 = vmul.f32 0.03125, %v267_v23 }
 0x252   :  { %v271_v25 = vadd.f32 1e-05, %v269_v24 }
 0x254   :  { %4315 = vrsqrt.f32 %v271_v25 }
 0x25a   :  { %v4314_v26 = vpop.eup %4313 }
 0x25b   :  { %v274_v28 = vmul.f32 %v4314_v26, %v258_v6 }
 0x25d   :  { %v283_v30 = vmul.f32 %v3786_v27, %v274_v28 }
 0x25e   :  { %v4316_v31 = vpop.eup %4315 }
 0x25f   :  { %v275_v32 = vmul.f32 %v4316_v31, %v259_v10  ;;  %v5112_v33 = vadd.f32 %v3787_v29, %v283_v30 }
 0x261   :  { %v284_v34 = vmul.f32 %v3786_v27, %v275_v32  ;;  %3979 = vmatprep.mubr.msk.f32.mxu1 %vm248_vm0, %v5112_v33 }
 0x263   :  { %v5116_v35 = vadd.f32 %v3787_v29, %v284_v34 }
 0x265   :  { %3980 = vmatmul.mubr.msk.f32.vlgmr.msra.gmra.mrb[0].mxu1 %vm248_vm0, %v5116_v35 }
 0x266   :  { %3984 = vmatprep.mubr.msk.f32.mxu1 %vm4756_vm1, %v4755_v36 }
 0x338   :  { %v3981_v38 = vpop.f32.mrb[0].mxu1 }
 0x339   :  { %v5126_v39 = vadd.f32 %v3981_v38, %v3788_v37  ;;  %v377_v40 = vpop.f32.mrb[1].mxu1 }
 0x33a   :  { %v5128_v41 = vadd.f32 %v3788_v37, %v377_v40 }
 0x33b   :  { %472 = vrot.lane.b32.xlu1 %v5126_v39, %s4757_s6 }
 0x33c   :  { %394 = vrot.lane.b32.xlu0 %v5128_v41, %s4757_s6 }
 0x3ad   :  { %v473_v43 = vpop.permute.xlu1 %472 }
 0x3ae   :  { %v395_v42 = vpop.permute.xlu0 %394 }
 0x3af   :  { %3983 = vmatpush3.xpose.msk.msra.mxu1 %vm396_vm2, %v395_v42 }
 0x3b0   :  { %3987 = vmatprep.subr.mxu1 %v4755_v36 }
 0x3b2   :  { %3985 = vmatmul.mubr.msk.f32.vlgmr.msra.gmra.mrb[2].mxu1 %vm396_vm2, %v5128_v41 }
 0x3b3   :  { %3988 = vmatpush3.xpose.msk.msra.mxu1 %vm396_vm2, %v473_v43  ;;  %3989 = vmatprep.mubr.msk.f32.mxu1 %vm4756_vm1, %v4755_v36 }
 0x3b4   :  { %3997 = vmatprep.subr.mxu1 %v4755_v36 }
 0x3b6   :  { %3990 = vmatmul.mubr.msk.f32.vlgmr.msra.gmra.mrb[4].mxu1 %vm396_vm2, %v5126_v39 }
 0x3b7   :  { %3999 = vmatprep.mubr.msk.f32.mxu1 %vm4756_vm1, %v4755_v36 }
 0x485   :  { %v467_v45 = vpop.f32.mrb[2].mxu1 }
 0x486   :  { %v548_v46 = vadd.f32 %v467_v45, %v5146_v44  ;;  %v3986_v47 = vpop.f32.mrb[3].mxu1 }
 0x488   :  { %v550_v49 = vsel %vm396_vm2, %v548_v46, -inf }
 0x489   :  { %551 = vmax.xlane.f32.xlu1 %v550_v49  ;;  %v544_v50 = vpop.f32.mrb[4].mxu1 }
 0x48a   :  { %v549_v51 = vadd.f32 %v544_v50, %v5149_v48  ;;  %v3991_v52 = vpop.f32.mrb[5].mxu1 }
 0x48c   :  { %v553_v53 = vsel %vm396_vm2, %v549_v51, -inf }
 0x48d   :  { %554 = vmax.xlane.f32.xlu0 %v553_v53 }
 0x49a   :  { %648 = vrot.lane.b32.xlu1 %v5126_v39, %s4758_s28 }
 0x49e   :  { %726 = vrot.lane.b32.xlu1 %v5128_v41, %s4759_s14 }
 0x4a2   :  { %804 = vrot.lane.b32.xlu1 %v5126_v39, %s4759_s14 }
 0x4a3   :  { %572 = vrot.lane.b32.xlu0 %v5128_v41, %s4758_s28 }
 0x516   :  { %v552_v54 = vpop.xlane.xlu1 %551 }
 0x517   :  { %v556_v55 = vsub.f32 %v548_v46, %v552_v54 }
 0x519   :  { %v558_v56 = vmul.f32 1.442695, %v556_v55 }
 0x51a   :  { %v649_v57 = vpop.permute.xlu1 %648  ;;  %v555_v58 = vpop.xlane.xlu0 %554 }
 0x51b   :  { %4317 = vpow2.f32 %v558_v56  ;;  %v557_v59 = vsub.f32 %v549_v51, %v555_v58  ;;  %3998 = vmatpush3.msra.mxu1 %v649_v57 }
 0x51c   :  { %4007 = vmatprep.subr.mxu1 %v4755_v36 }
 0x51d   :  { %v560_v60 = vmul.f32 1.442695, %v557_v59 }
 0x51e   :  { %v573_v61 = vpop.permute.xlu0 %572  ;;  %v727_v2 = vpop.permute.xlu1 %726 }
 0x51f   :  { %4319 = vpow2.f32 %v560_v60  ;;  %3993 = vmatpush3.msra.mxu0 %v573_v61 }
 0x520   :  { %4002 = vmatprep.subr.mxu0 %v4755_v36 }
 0x522   :  { %v805_v3 = vpop.permute.xlu1 %804 }
 0x525   :  { %v4318_v62 = vpop.eup %4317 }
 0x526   :  { %v562_v63 = vsel %vm396_vm2, %v4318_v62, 0.0 }
 0x527   :  { %563 = vadd.xlane.f32.xlu0 %v562_v63 }
 0x529   :  { %v4320_v0 = vpop.eup %4319 }
 0x52a   :  { %v565_v1 = vsel %vm396_vm2, %v4320_v0, 0.0 }
 0x52b   :  { %566 = vadd.xlane.f32.xlu1 %v565_v1 }
 0x53c   :  { %802 = vrot.lane.b32.xlu1 %v5126_v39, %s4760_s9 }
 0x53d   :  { %724 = vrot.lane.b32.xlu0 %v5128_v41, %s4760_s9 }
 0x5b4   :  { %v564_v4 = vpop.xlane.xlu0 %563 }
 0x5b5   :  { %4321 = vrcp.f32 %v564_v4 }
 0x5b8   :  { %v567_v5 = vpop.xlane.xlu1 %566  ;;  %v725_v10 = vpop.permute.xlu0 %724 }
 0x5b9   :  { %4323 = vrcp.f32 %v567_v5 }
 0x5bc   :  { %v803_v11 = vpop.permute.xlu1 %802 }
 0x5bf   :  { %v4322_v6 = vpop.eup %4321 }
 0x5c0   :  { %v569_v7 = vmul.f32 %v4322_v6, %v4318_v62 }
 0x5c2   :  { %3995 = vmatmul.mubr.msk.f32.vlgmr.msra.gmra.mrb[0].mxu0 %vm396_vm2, %v569_v7 }
 0x5c3   :  { %v4324_v8 = vpop.eup %4323  ;;  %4003 = vmatpush3.xpose.msk.msra.mxu0 %vm396_vm2, %v727_v2  ;;  %4004 = vmatprep.mubr.msk.f32.mxu0 %vm4756_vm1, %v4755_v36 }
 0x5c4   :  { %v571_v9 = vmul.f32 %v4324_v8, %v4320_v0  ;;  %4012 = vmatprep.subr.mxu0 %v4755_v36 }
 0x5c6   :  { %4000 = vmatmul.mubr.msk.f32.vlgmr.msra.gmra.mrb[6].mxu1 %vm396_vm2, %v571_v9  ;;  %4005 = vmatmul.mubr.msk.f32.vlgmr.msra.gmra.mrb[2].mxu0 %vm396_vm2, %v725_v10 }
 0x5c7   :  { %4008 = vmatpush3.xpose.msk.msra.mxu1 %vm396_vm2, %v805_v3  ;;  %4009 = vmatprep.mubr.msk.f32.mxu1 %vm4756_vm1, %v4755_v36 }
 0x5c8   :  { %4017 = vmatprep.subr.mxu1 %v4755_v36  ;;  %4014 = vmatprep.mubr.msk.f32.mxu0 %vm4756_vm1, %v4755_v36 }
 0x5ca   :  { %4010 = vmatmul.mubr.msk.f32.vlgmr.msra.gmra.mrb[8].mxu1 %vm396_vm2, %v803_v11 }
 0x5cb   :  { %4019 = vmatprep.mubr.msk.f32.mxu1 %vm4756_vm1, %v4755_v36 }
 0x695   :  { %v5184_v12 = vpop.f32.mrb[0].mxu0 }
 0x696   :  { %v3996_v13 = vpop.f32.mrb[1].mxu0 }
 0x699   :  { %v5186_v14 = vpop.f32.mrb[6].mxu1  ;;  %v798_v15 = vpop.f32.mrb[2].mxu0 }
 0x69a   :  { %v880_v16 = vadd.f32 %v798_v15, %v5146_v44  ;;  %v4001_v17 = vpop.f32.mrb[7].mxu1  ;;  %v4006_v18 = vpop.f32.mrb[3].mxu0 }
 0x69c   :  { %v882_v19 = vsel %vm396_vm2, %v880_v16, -inf }
 0x69d   :  { %883 = vmax.xlane.f32.xlu0 %v882_v19  ;;  %v876_v20 = vpop.f32.mrb[8].mxu1 }
 0x69e   :  { %v881_v21 = vadd.f32 %v876_v20, %v5149_v48  ;;  %v4011_v22 = vpop.f32.mrb[9].mxu1 }
 0x6a0   :  { %v885_v23 = vsel %vm396_vm2, %v881_v21, -inf }
 0x6a1   :  { %886 = vmax.xlane.f32.xlu1 %v885_v23 }
 0x6b2   :  { %980 = vrot.lane.b32.xlu1 %v5126_v39, %s4761_s3 }
 0x6b3   :  { %904 = vrot.lane.b32.xlu0 %v5128_v41, %s4761_s3  ;;  %s5609_s3 = sld [smem:[#allocation40_spill]] }
 0x6b6   :  { %1058 = vrot.lane.b32.xlu1 %v5128_v41, %s4762_s24 }
 0x6ba   :  { %1136 = vrot.lane.b32.xlu1 %v5126_v39, %s4762_s24 }
 0x6be   :  { %1134 = vrot.lane.b32.xlu1 %v5126_v39, %s4763_s2 }
 0x72a   :  { %v884_v24 = vpop.xlane.xlu0 %883 }
 0x72b   :  { %v888_v25 = vsub.f32 %v880_v16, %v884_v24 }
 0x72d   :  { %v890_v26 = vmul.f32 1.442695, %v888_v25 }
 0x72e   :  { %v905_v27 = vpop.permute.xlu0 %904  ;;  %v887_v28 = vpop.xlane.xlu1 %886 }
 0x72f   :  { %4325 = vpow2.f32 %v890_v26  ;;  %v889_v29 = vsub.f32 %v881_v21, %v887_v28  ;;  %4013 = vmatpush3.msra.mxu0 %v905_v27 }
 0x730   :  { %4022 = vmatprep.subr.mxu0 %v4755_v36 }
 0x731   :  { %v892_v30 = vmul.f32 1.442695, %v889_v29 }
 0x732   :  { %v981_v31 = vpop.permute.xlu1 %980 }
 0x733   :  { %4327 = vpow2.f32 %v892_v30  ;;  %4018 = vmatpush3.msra.mxu1 %v981_v31 }
 0x734   :  { %4027 = vmatprep.subr.mxu1 %v4755_v36 }
 0x736   :  { %v1059_v43 = vpop.permute.xlu1 %1058 }
 0x739   :  { %v4326_v32 = vpop.eup %4325 }
 0x73a   :  { %v894_v34 = vsel %vm396_vm2, %v4326_v32, 0.0  ;;  %v1137_v49 = vpop.permute.xlu1 %1136 }
 0x73b   :  { %895 = vadd.xlane.f32.xlu0 %v894_v34 }
 0x73d   :  { %v4328_v37 = vpop.eup %4327 }
 0x73e   :  { %v897_v38 = vsel %vm396_vm2, %v4328_v37, 0.0  ;;  %v1135_v52 = vpop.permute.xlu1 %1134 }
 0x73f   :  { %898 = vadd.xlane.f32.xlu0 %v897_v38 }
 0x755   :  { %1056 = vrot.lane.b32.xlu0 %v5128_v41, %s4763_s2 }
 0x7c8   :  { %v896_v40 = vpop.xlane.xlu0 %895 }
 0x7c9   :  { %4329 = vrcp.f32 %v896_v40 }
 0x7cc   :  { %v899_v42 = vpop.xlane.xlu0 %898 }
 0x7cd   :  { %4331 = vrcp.f32 %v899_v42 }
 0x7d0   :  { %v1057_v51 = vpop.permute.xlu0 %1056 }
 0x7d3   :  { %v4330_v45 = vpop.eup %4329 }
 0x7d4   :  { %v901_v46 = vmul.f32 %v4330_v45, %v4326_v32 }
 0x7d6   :  { %4015 = vmatmul.mubr.msk.f32.vlgmr.msra.gmra.mrb[4].mxu0 %vm396_vm2, %v901_v46 }
 0x7d7   :  { %v4332_v47 = vpop.eup %4331  ;;  %4023 = vmatpush3.xpose.msk.msra.mxu0 %vm396_vm2, %v1059_v43  ;;  %4024 = vmatprep.mubr.msk.f32.mxu0 %vm4756_vm1, %v4755_v36 }
 0x7d8   :  { %v903_v50 = vmul.f32 %v4332_v47, %v4328_v37  ;;  %4032 = vmatprep.subr.mxu0 %v4755_v36 }
 0x7da   :  { %4020 = vmatmul.mubr.msk.f32.vlgmr.msra.gmra.mrb[10].mxu1 %vm396_vm2, %v903_v50  ;;  %4025 = vmatmul.mubr.msk.f32.vlgmr.msra.gmra.mrb[6].mxu0 %vm396_vm2, %v1057_v51 }
 0x7db   :  { %4028 = vmatpush3.xpose.msk.msra.mxu1 %vm396_vm2, %v1137_v49  ;;  %4029 = vmatprep.mubr.msk.f32.mxu1 %vm4756_vm1, %v4755_v36 }
 0x7dc   :  { %4037 = vmatprep.subr.mxu1 %v4755_v36  ;;  %4034 = vmatprep.mubr.msk.f32.mxu0 %vm4756_vm1, %v4755_v36 }
 0x7de   :  { %4030 = vmatmul.mubr.msk.f32.vlgmr.msra.gmra.mrb[12].mxu1 %vm396_vm2, %v1135_v52 }
 0x7df   :  { %4039 = vmatprep.mubr.msk.f32.mxu1 %vm4756_vm1, %v4755_v36 }
 0x8a9   :  { %v5222_v53 = vpop.f32.mrb[4].mxu0 }
 0x8aa   :  { %v4016_v54 = vpop.f32.mrb[5].mxu0 }
 0x8ad   :  { %v5224_v55 = vpop.f32.mrb[10].mxu1  ;;  %v1130_v56 = vpop.f32.mrb[6].mxu0 }
 0x8ae   :  { %v1212_v57 = vadd.f32 %v1130_v56, %v5146_v44  ;;  %v4021_v58 = vpop.f32.mrb[11].mxu1  ;;  %v4026_v59 = vpop.f32.mrb[7].mxu0 }
 0x8af   :  { %v389_v59 = vld [vmem:[%s5578_s8 + $0x8] sm:$0xff] }
 0x8b0   :  { %v1214_v60 = vsel %vm396_vm2, %v1212_v57, -inf }
 0x8b1   :  { %1215 = vmax.xlane.f32.xlu0 %v1214_v60  ;;  %v1208_v61 = vpop.f32.mrb[12].mxu1 }
 0x8b2   :  { %v1213_v62 = vadd.f32 %v1208_v61, %v5149_v48  ;;  %v4031_v63 = vpop.f32.mrb[13].mxu1  ;;  %v390_v61 = vld [vmem:[%s5578_s8 + $0x10] sm:$0xff] }
 0x8b4   :  { %v1217_v0 = vsel %vm396_vm2, %v1213_v62, -inf }
 0x8b5   :  { %1218 = vmax.xlane.f32.xlu1 %v1217_v0 }
 0x8c6   :  { %1312 = vrot.lane.b32.xlu1 %v5126_v39, %s4764_s26 }
 0x8c7   :  { %1236 = vrot.lane.b32.xlu0 %v5128_v41, %s4764_s26 }
 0x8ca   :  { %1390 = vrot.lane.b32.xlu1 %v5128_v41, %s4765_s29 }
 0x8ce   :  { %1468 = vrot.lane.b32.xlu1 %v5126_v39, %s4765_s29 }
 0x8d2   :  { %1466 = vrot.lane.b32.xlu1 %v5126_v39, %s4766_s25 }
 0x93e   :  { %v1216_v1 = vpop.xlane.xlu0 %1215 }
 0x93f   :  { %v1220_v2 = vsub.f32 %v1212_v57, %v1216_v1 }
 0x941   :  { %v1222_v3 = vmul.f32 1.442695, %v1220_v2 }
 0x942   :  { %v1237_v4 = vpop.permute.xlu0 %1236  ;;  %v1219_v5 = vpop.xlane.xlu1 %1218 }
 0x943   :  { %4333 = vpow2.f32 %v1222_v3  ;;  %v1221_v6 = vsub.f32 %v1213_v62, %v1219_v5  ;;  %4033 = vmatpush3.msra.mxu0 %v1237_v4  ;;  %v391_v62 = vld [vmem:[%s5578_s8 + $0x18] sm:$0xff] }
 0x944   :  { %4042 = vmatprep.subr.mxu0 %v4755_v36  ;;  %v4228_v63 = vpack.c.bf16 %v391_v62, %v390_v61 }
 0x945   :  { %v1224_v7 = vmul.f32 1.442695, %v1221_v6 }
 0x946   :  { %v1313_v8 = vpop.permute.xlu1 %1312 }
 0x947   :  { %4335 = vpow2.f32 %v1224_v7  ;;  %4038 = vmatpush3.msra.mxu1 %v1313_v8 }
 0x948   :  { %4047 = vmatprep.subr.mxu1 %v4755_v36 }
 0x94a   :  { %v1391_v17 = vpop.permute.xlu1 %1390 }
 0x94d   :  { %v4334_v9 = vpop.eup %4333 }
 0x94e   :  { %v1226_v10 = vsel %vm396_vm2, %v4334_v9, 0.0  ;;  %v1469_v21 = vpop.permute.xlu1 %1468 }
 0x94f   :  { %1227 = vadd.xlane.f32.xlu0 %v1226_v10 }
 0x951   :  { %v4336_v11 = vpop.eup %4335 }
 0x952   :  { %v1229_v13 = vsel %vm396_vm2, %v4336_v11, 0.0  ;;  %v1467_v24 = vpop.permute.xlu1 %1466 }
 0x953   :  { %1230 = vadd.xlane.f32.xlu0 %v1229_v13 }
 0x969   :  { %1388 = vrot.lane.b32.xlu0 %v5128_v41, %s4766_s25 }
 0x9dc   :  { %v1228_v15 = vpop.xlane.xlu0 %1227 }
 0x9dd   :  { %4337 = vrcp.f32 %v1228_v15 }
 0x9e0   :  { %v1231_v16 = vpop.xlane.xlu0 %1230 }
 0x9e1   :  { %4339 = vrcp.f32 %v1231_v16 }
 0x9e4   :  { %v1389_v23 = vpop.permute.xlu0 %1388 }
 0x9e7   :  { %v4338_v18 = vpop.eup %4337 }
 0x9e8   :  { %v1233_v19 = vmul.f32 %v4338_v18, %v4334_v9 }
 0x9ea   :  { %4035 = vmatmul.mubr.msk.f32.vlgmr.msra.gmra.mrb[8].mxu0 %vm396_vm2, %v1233_v19 }
 0x9eb   :  { %v4340_v20 = vpop.eup %4339  ;;  %4043 = vmatpush3.xpose.msk.msra.mxu0 %vm396_vm2, %v1391_v17  ;;  %4044 = vmatprep.mubr.msk.f32.mxu0 %vm4756_vm1, %v4755_v36 }
 0x9ec   :  { %v1235_v22 = vmul.f32 %v4340_v20, %v4336_v11  ;;  %4052 = vmatprep.subr.mxu0 %v4755_v36 }
 0x9ee   :  { %4040 = vmatmul.mubr.msk.f32.vlgmr.msra.gmra.mrb[14].mxu1 %vm396_vm2, %v1235_v22  ;;  %4045 = vmatmul.mubr.msk.f32.vlgmr.msra.gmra.mrb[10].mxu0 %vm396_vm2, %v1389_v23 }
 0x9ef   :  { %4048 = vmatpush3.xpose.msk.msra.mxu1 %vm396_vm2, %v1469_v21  ;;  %4049 = vmatprep.mubr.msk.f32.mxu1 %vm4756_vm1, %v4755_v36 }
 0x9f0   :  { %4057 = vmatprep.subr.mxu1 %v4755_v36  ;;  %4054 = vmatprep.mubr.msk.f32.mxu0 %vm4756_vm1, %v4755_v36 }
 0x9f2   :  { %4050 = vmatmul.mubr.msk.f32.vlgmr.msra.gmra.mrb[16].mxu1 %vm396_vm2, %v1467_v24 }
 0x9f3   :  { %4059 = vmatprep.mubr.msk.f32.mxu1 %vm4756_vm1, %v4755_v36 }
 0xabd   :  { %v1308_v25 = vpop.f32.mrb[8].mxu0 }
 0xabe   :  { %v4036_v26 = vpop.f32.mrb[9].mxu0 }
 0xac1   :  { %v1384_v27 = vpop.f32.mrb[14].mxu1  ;;  %v1462_v28 = vpop.f32.mrb[10].mxu0 }
 0xac2   :  { %v1544_v29 = vadd.f32 %v1462_v28, %v5146_v44  ;;  %v4041_v30 = vpop.f32.mrb[15].mxu1  ;;  %v4046_v31 = vpop.f32.mrb[11].mxu0 }
 0xac4   :  { %v1546_v32 = vsel %vm396_vm2, %v1544_v29, -inf }
 0xac5   :  { %1547 = vmax.xlane.f32.xlu0 %v1546_v32  ;;  %v1540_v34 = vpop.f32.mrb[16].mxu1 }
 0xac6   :  { %v1545_v37 = vadd.f32 %v1540_v34, %v5149_v48  ;;  %v4051_v38 = vpop.f32.mrb[17].mxu1 }
 0xac8   :  { %v1549_v40 = vsel %vm396_vm2, %v1545_v37, -inf }
 0xac9   :  { %1550 = vmax.xlane.f32.xlu1 %v1549_v40  ;;  %v1887_v40 = vld [vmem:[%s5580_s10] sm:$0xff] }
 0xada   :  { %1644 = vrot.lane.b32.xlu1 %v5126_v39, %s4767_s11 }
 0xade   :  { %1722 = vrot.lane.b32.xlu1 %v5222_v53, %s4740_s21 }
 0xae2   :  { %1724 = vrot.lane.b32.xlu1 %v5224_v55, %s4740_s21 }
 0xae6   :  { %1732 = vrot.lane.b32.xlu1 %v1384_v27, %s4743_s22 }
 0xb52   :  { %v1548_v44 = vpop.xlane.xlu0 %1547 }
 0xb53   :  { %v1552_v42 = vsub.f32 %v1544_v29, %v1548_v44  ;;  %v1888_v44 = vld [vmem:[%s5580_s10 + $0x8] sm:$0xff] }
 0xb55   :  { %v1554_v43 = vmul.f32 1.442695, %v1552_v42  ;;  %v1981_v42 = vld [vmem:[%s5582_s12 + $0x10] sm:$0xff] }
 0xb56   :  { %v1551_v45 = vpop.xlane.xlu1 %1550 }
 0xb57   :  { %4341 = vpow2.f32 %v1554_v43  ;;  %v1553_v48 = vsub.f32 %v1545_v37, %v1551_v45  ;;  %v1980_v37 = vld [vmem:[%s5582_s12 + $0x8] sm:$0xff]  ;;  %v4232_v43 = vpack.c.bf16 %v1888_v44, %v1887_v40  ;;  %v1982_v45 = vld [vmem:[%s5582_s12 + $0x18] sm:$0xff] }
 0xb59   :  { %v1556_v46 = vmul.f32 1.442695, %v1553_v48  ;;  %v4244_v48 = vpack.c.bf16 %v1982_v45, %v1981_v42 }
 0xb5a   :  { %v1645_v47 = vpop.permute.xlu1 %1644 }
 0xb5b   :  { %4343 = vpow2.f32 %v1556_v46  ;;  %4058 = vmatpush3.msra.mxu1 %v1645_v47  ;;  %v246_v46 = vld [vmem:[#allocation5] sm:$0xff] }
 0xb5c   :  { %4233 = vmatprep.subr.bf16.mxu1 %v4232_v43  ;;  %v1889_v47 = vld [vmem:[%s5580_s10 + $0x10] sm:$0xff] }
 0xb5e   :  { %v1723_v4 = vpop.permute.xlu1 %1722 }
 0xb5f   :  { %v1744_v7 = vsel %vm396_vm2, %v5184_v12, %v1723_v4  ;;  %v3815_v12 = vld [vmem:[#allocation14] ss:$0 sm:$0xff] }
 0xb61   :  { %v4342_v49 = vpop.eup %4341 }
 0xb62   :  { %v1558_v39 = vsel %vm396_vm2, %v4342_v49, 0.0  ;;  %v1725_v5 = vpop.permute.xlu1 %1724 }
 0xb63   :  { %1559 = vadd.xlane.f32.xlu0 %v1558_v39  ;;  %v1745_v13 = vsel %vm396_vm2, %v5186_v14, %v1725_v5 }
 0xb65   :  { %v4344_v50 = vpop.eup %4343 }
 0xb66   :  { %v1561_v51 = vsel %vm396_vm2, %v4344_v50, 0.0  ;;  %v1733_v8 = vpop.permute.xlu1 %1732 }
 0xb67   :  { %1562 = vadd.xlane.f32.xlu0 %v1561_v51  ;;  %v1748_v15 = vsel %vm1746_vm4, %v1745_v13, %v1733_v8  ;;  %v5368_v13 = vld [vmem:[#allocation8] sm:$0xff] }
 0xb7d   :  { %1568 = vrot.lane.b32.xlu0 %v5128_v41, %s4767_s11  ;;  %v388_v41 = vld [vmem:[%s5578_s8] sm:$0xff] }
 0xb7e   :  { %v4224_v60 = vpack.c.bf16 %v389_v59, %v388_v41  ;;  %v3819_v59 = vld [vmem:[#allocation11 + $0x1] ss:$0 sm:$0xff] }
 0xb81   :  { %1730 = vrot.lane.b32.xlu0 %v1308_v25, %s4743_s22 }
 0xbf0   :  { %v1560_v52 = vpop.xlane.xlu0 %1559 }
 0xbf1   :  { %4345 = vrcp.f32 %v1560_v52 }
 0xbf4   :  { %v1563_v53 = vpop.xlane.xlu0 %1562 }
 0xbf5   :  { %4347 = vrcp.f32 %v1563_v53 }
 0xbf8   :  { %v1569_v54 = vpop.permute.xlu0 %1568 }
 0xbf9   :  { %4053 = vmatpush3.msra.mxu0 %v1569_v54 }
 0xbfa   :  { %4225 = vmatprep.subr.bf16.mxu0 %v4224_v60 }
 0xbfb   :  { %v4346_v55 = vpop.eup %4345 }
 0xbfc   :  { %v1565_v56 = vmul.f32 %v4346_v55, %v4342_v49  ;;  %v1731_v6 = vpop.permute.xlu0 %1730  ;;  %v1890_v49 = vld [vmem:[%s5580_s10 + $0x18] sm:$0xff] }
 0xbfd   :  { %v1747_v9 = vsel %vm1746_vm4, %v1744_v7, %v1731_v6  ;;  %v4236_v39 = vpack.c.bf16 %v1890_v49, %v1889_v47  ;;  %v3820_v7 = vld [vmem:[#allocation16] ss:$0 sm:$0xff] }
 0xbfe   :  { %4055 = vmatmul.mubr.msk.f32.vlgmr.msra.gmra.mrb[12].mxu0 %vm396_vm2, %v1565_v56 }
 0xbff   :  { %v4348_v57 = vpop.eup %4347  ;;  %4227 = vmatpush3.bf16.msra.mxu0 %v4224_v60 }
 0xc00   :  { %v1567_v58 = vmul.f32 %v4348_v57, %v4344_v50  ;;  %4229 = vmatprep.subr.bf16.mxu0 %v4228_v63  ;;  %v247_v50 = vld [vmem:[#allocation5 + $0x8] sm:$0xff] }
 0xc02   :  { %4060 = vmatmul.mubr.msk.f32.vlgmr.msra.gmra.mrb[18].mxu1 %vm396_vm2, %v1567_v58  ;;  %v3818_v58 = vld [vmem:[#allocation10 + $0x1] ss:$0 sm:$0xff] }
 0xc03   :  { %4231 = vmatpush3.bf16.msra.mxu0 %v4228_v63  ;;  %4235 = vmatpush3.bf16.msra.mxu1 %v4232_v43 }
 0xc04   :  { %4237 = vmatprep.subr.bf16.mxu1 %v4236_v39 }
 0xc07   :  { %4239 = vmatpush3.bf16.msra.mxu1 %v4236_v39 }
 0xc08   :  { %4095 = vmatprep.subr.mxu1 %v4755_v36 }
 0xcd1   :  { %v1640_v0 = vpop.f32.mrb[12].mxu0 }
 0xcd2   :  { %1738 = vrot.lane.b32.xlu0 %v1640_v0, %s4768_s7  ;;  %v4056_v1 = vpop.f32.mrb[13].mxu0 }
 0xcd5   :  { %v1716_v2 = vpop.f32.mrb[18].mxu1 }
 0xcd6   :  { %1740 = vrot.lane.b32.xlu1 %v1716_v2, %s4768_s7  ;;  %v4061_v3 = vpop.f32.mrb[19].mxu1  ;;  %v3823_v2 = vld [vmem:[#allocation17] ss:$0 sm:$0xff] }
 0xd44   :  { %v1739_v10 = vpop.permute.xlu0 %1738 }
 0xd45   :  { %v1750_v11 = vsel %vm1749_vm3, %v1747_v9, %v1739_v10 }
 0xd46   :  { %4070 = vmatprep.mubr.msk.f32.mxu0 %vm248_vm0, %v1750_v11 }
 0xd48   :  { %v1741_v16 = vpop.permute.xlu1 %1740 }
 0xd49   :  { %v1751_v17 = vsel %vm1749_vm3, %v1748_v15, %v1741_v16 }
 0xd4a   :  { %4071 = vmatmul.mubr.msk.f32.vlgmr.msra.gmra.mrb[14].mxu0 %vm248_vm0, %v1751_v17 }
 0xd4b   :  { %4092 = vmatprep.mubr.msk.f32.mxu0 %vm248_vm0, %v246_v46 }
 0xe1d   :  { %v4072_v18 = vpop.f32.mrb[14].mxu0 }
 0xe1e   :  { %v1836_v19 = vadd.f32 %v4072_v18, %v3815_v12  ;;  %v1830_v20 = vpop.f32.mrb[15].mxu0 }
 0xe1f   :  { %v1831_v21 = vadd.f32 %v3815_v12, %v1830_v20  ;;  %v5371_v12 = vld [vmem:[#allocation8 + $0x8] sm:$0xff] }
 0xe20   :  { %v1840_v22 = vadd.f32 %v1836_v19, %v5116_v35 }
 0xe21   :  { %v1839_v23 = vadd.f32 %v1831_v21, %v5112_v33  ;;  %v1979_v33 = vld [vmem:[%s5582_s12] sm:$0xff] }
 0xe22   :  { %v1844_v24 = vsel %vm248_vm0, %v1840_v22, 0.0  ;;  %v4240_v38 = vpack.c.bf16 %v1980_v37, %v1979_v33 }
 0xe23   :  { %1845 = vadd.xlane.f32.xlu1 %v1844_v24  ;;  %v1841_v14 = vsel %vm248_vm0, %v1839_v23, 0.0 }
 0xe24   :  { %1842 = vadd.xlane.f32.xlu0 %v1841_v14  ;;  %4241 = vmatprep.subr.bf16.mxu0 %v4240_v38 }
 0xe25   :  { %4243 = vmatpush3.bf16.msra.mxu0 %v4240_v38 }
 0xe26   :  { %4245 = vmatprep.subr.bf16.mxu0 %v4244_v48 }
 0xe29   :  { %4247 = vmatpush3.bf16.msra.mxu0 %v4244_v48 }
 0xe2a   :  { %4105 = vmatprep.subr.mxu0 %v4755_v36 }
 0xe2c   :  { %4093 = vmatmul.mubr.msk.f32.vlgmr.msra.gmra.mrb[16].mxu0 %vm248_vm0, %v247_v50 }
 0xe2d   :  { %4107 = vmatprep.mubr.msk.f32.mxu0 %vm4756_vm1, %v4755_v36 }
 0xeb0   :  { %v1846_v25 = vpop.xlane.xlu1 %1845 }
 0xeb1   :  { %v1848_v26 = vmul.f32 0.03125, %v1846_v25  ;;  %v1843_v27 = vpop.xlane.xlu0 %1842 }
 0xeb2   :  { %v1847_v28 = vmul.f32 0.03125, %v1843_v27 }
 0xeb3   :  { %v1850_v29 = vsub.f32 %v1840_v22, %v1848_v26 }
 0xeb4   :  { %v1849_v30 = vsub.f32 %v1839_v23, %v1847_v28 }
 0xeb5   :  { %v1852_v34 = vmul.f32 %v1850_v29, %v1850_v29 }
 0xeb6   :  { %v1851_v31 = vmul.f32 %v1849_v30, %v1849_v30 }
 0xeb7   :  { %v1856_v35 = vsel %vm248_vm0, %v1852_v34, 0.0 }
 0xeb8   :  { %v1853_v32 = vsel %vm248_vm0, %v1851_v31, 0.0 }
 0xeb9   :  { %1854 = vadd.xlane.f32.xlu0 %v1853_v32 }
 0xebd   :  { %1857 = vadd.xlane.f32.xlu0 %v1856_v35 }
 0xeff   :  { %v4094_v3 = vpop.f32.mrb[16].mxu0 }
 0xf00   :  { %v5346_v4 = vadd.f32 %v4094_v3, %v3823_v2  ;;  %v2062_v5 = vpop.f32.mrb[17].mxu0 }
 0xf01   :  { %v5348_v6 = vadd.f32 %v3823_v2, %v2062_v5 }
 0xf46   :  { %v1855_v51 = vpop.xlane.xlu0 %1854 }
 0xf47   :  { %v1859_v52 = vmul.f32 0.03125, %v1855_v51 }
 0xf49   :  { %v1861_v53 = vadd.f32 1e-05, %v1859_v52 }
 0xf4a   :  { %v1858_v54 = vpop.xlane.xlu0 %1857 }
 0xf4b   :  { %4349 = vrsqrt.f32 %v1861_v53  ;;  %v1860_v55 = vmul.f32 0.03125, %v1858_v54 }
 0xf4d   :  { %v1862_v56 = vadd.f32 1e-05, %v1860_v55 }
 0xf4f   :  { %4351 = vrsqrt.f32 %v1862_v56 }
 0xf55   :  { %v4350_v57 = vpop.eup %4349 }
 0xf56   :  { %v1865_v41 = vmul.f32 %v4350_v57, %v1849_v30 }
 0xf58   :  { %v1875_v60 = vmul.f32 %v3818_v58, %v1865_v41 }
 0xf59   :  { %v4352_v61 = vpop.eup %4351 }
 0xf5a   :  { %v1866_v62 = vmul.f32 %v4352_v61, %v1850_v29  ;;  %v5336_v63 = vadd.f32 %v3819_v59, %v1875_v60 }
 0xf5c   :  { %v1876_v0 = vmul.f32 %v3818_v58, %v1866_v62  ;;  %4081 = vmatprep.mubr.msk.f32.mxu1 %vm248_vm0, %v5336_v63 }
 0xf5e   :  { %v5340_v1 = vadd.f32 %v3819_v59, %v1876_v0 }
 0xf60   :  { %4082 = vmatmul.mubr.msk.f32.vlgmr.msra.gmra.mrb[20].mxu1 %vm248_vm0, %v5340_v1 }
 0xf61   :  { %4097 = vmatprep.mubr.msk.f32.mxu1 %vm4756_vm1, %v4755_v36  ;;  %4096 = vmatpush3.xpose.msk.msra.mxu1 %vm396_vm2, %v5348_v6 }
 0xf62   :  { %4100 = vmatprep.subr.mxu1 %v4755_v36 }
0x1033   :  { %v4083_v8 = vpop.f32.mrb[20].mxu1 }
0x1034   :  { %v1970_v9 = vpop.f32.mrb[21].mxu1  ;;  %v5361_v11 = vadd.f32 %v4083_v8, %v3820_v7 }
0x1035   :  { %v5353_v10 = vadd.f32 %v3820_v7, %v1970_v9 }
0x1037   :  { %4098 = vmatmul.mubr.msk.f32.vlgmr.msra.gmra.mrb[22].mxu1 %vm396_vm2, %v5353_v10 }
0x1038   :  { %4101 = vmatpush3.xpose.msk.msra.mxu1 %vm396_vm2, %v5346_v4  ;;  %4102 = vmatprep.mubr.msk.f32.mxu1 %vm4756_vm1, %v4755_v36 }
0x1039   :  { %4110 = vmatprep.subr.mxu1 %v4755_v36 }
0x103b   :  { %4103 = vmatmul.mubr.msk.f32.vlgmr.msra.gmra.mrb[24].mxu1 %vm396_vm2, %v5361_v11 }
0x103c   :  { %4112 = vmatprep.mubr.msk.f32.mxu1 %vm4756_vm1, %v4755_v36 }
0x110a   :  { %v2150_v15 = vpop.f32.mrb[22].mxu1 }
0x110b   :  { %v2230_v16 = vadd.f32 %v2150_v15, %v5368_v13  ;;  %v4099_v17 = vpop.f32.mrb[23].mxu1 }
0x110d   :  { %v2232_v18 = vsel %vm396_vm2, %v2230_v16, -inf }
0x110e   :  { %2233 = vmax.xlane.f32.xlu0 %v2232_v18  ;;  %v2226_v19 = vpop.f32.mrb[24].mxu1 }
0x110f   :  { %v2231_v20 = vadd.f32 %v2226_v19, %v5371_v12  ;;  %v4104_v21 = vpop.f32.mrb[25].mxu1 }
0x1111   :  { %v2235_v22 = vsel %vm396_vm2, %v2231_v20, -inf }
0x1112   :  { %2236 = vmax.xlane.f32.xlu1 %v2235_v22 }
0x1123   :  { %2330 = vrot.lane.b32.xlu1 %v5346_v4, %s4757_s6 }
0x1124   :  { %2254 = vrot.lane.b32.xlu0 %v5348_v6, %s4757_s6 }
0x1127   :  { %2408 = vrot.lane.b32.xlu1 %v5348_v6, %s4760_s9 }
0x112b   :  { %2486 = vrot.lane.b32.xlu1 %v5346_v4, %s4760_s9 }
0x119b   :  { %v2234_v23 = vpop.xlane.xlu0 %2233 }
0x119c   :  { %v2238_v24 = vsub.f32 %v2230_v16, %v2234_v23 }
0x119e   :  { %v2240_v14 = vmul.f32 1.442695, %v2238_v24 }
0x119f   :  { %v2255_v25 = vpop.permute.xlu0 %2254  ;;  %v2237_v26 = vpop.xlane.xlu1 %2236 }
0x11a0   :  { %4353 = vpow2.f32 %v2240_v14  ;;  %v2239_v27 = vsub.f32 %v2231_v20, %v2237_v26  ;;  %4106 = vmatpush3.msra.mxu0 %v2255_v25 }
0x11a1   :  { %4115 = vmatprep.subr.mxu0 %v4755_v36 }
0x11a2   :  { %v2242_v28 = vmul.f32 1.442695, %v2239_v27 }
0x11a3   :  { %v2331_v29 = vpop.permute.xlu1 %2330 }
0x11a4   :  { %4355 = vpow2.f32 %v2242_v28  ;;  %4111 = vmatpush3.msra.mxu1 %v2331_v29 }
0x11a5   :  { %4120 = vmatprep.subr.mxu1 %v4755_v36 }
0x11a7   :  { %v2409_v35 = vpop.permute.xlu1 %2408 }
0x11aa   :  { %v4354_v30 = vpop.eup %4353 }
0x11ab   :  { %v2244_v31 = vsel %vm396_vm2, %v4354_v30, 0.0  ;;  %v2487_v33 = vpop.permute.xlu1 %2486 }
0x11ac   :  { %2245 = vadd.xlane.f32.xlu0 %v2244_v31 }
0x11ae   :  { %v4356_v32 = vpop.eup %4355 }
0x11af   :  { %v2247_v34 = vsel %vm396_vm2, %v4356_v32, 0.0 }
0x11b0   :  { %2248 = vadd.xlane.f32.xlu1 %v2247_v34 }
0x11c1   :  { %2484 = vrot.lane.b32.xlu1 %v5361_v11, %s4760_s9 }
0x11c2   :  { %2406 = vrot.lane.b32.xlu0 %v5353_v10, %s4760_s9 }
0x1239   :  { %v2246_v37 = vpop.xlane.xlu0 %2245 }
0x123a   :  { %4357 = vrcp.f32 %v2246_v37 }
0x123d   :  { %v2249_v38 = vpop.xlane.xlu1 %2248  ;;  %v2407_v45 = vpop.permute.xlu0 %2406 }
0x123e   :  { %4359 = vrcp.f32 %v2249_v38 }
0x1241   :  { %v2485_v48 = vpop.permute.xlu1 %2484 }
0x1244   :  { %v4358_v40 = vpop.eup %4357 }
0x1245   :  { %v2251_v44 = vmul.f32 %v4358_v40, %v4354_v30 }
0x1247   :  { %4108 = vmatmul.mubr.msk.f32.vlgmr.msra.gmra.mrb[18].mxu0 %vm396_vm2, %v2251_v44 }
0x1248   :  { %v4360_v42 = vpop.eup %4359  ;;  %4116 = vmatpush3.xpose.msk.msra.mxu0 %vm396_vm2, %v2409_v35  ;;  %4117 = vmatprep.mubr.msk.f32.mxu0 %vm4756_vm1, %v4755_v36 }
0x1249   :  { %v2253_v43 = vmul.f32 %v4360_v42, %v4356_v32  ;;  %4125 = vmatprep.subr.mxu0 %v4755_v36 }
0x124b   :  { %4113 = vmatmul.mubr.msk.f32.vlgmr.msra.gmra.mrb[26].mxu1 %vm396_vm2, %v2253_v43  ;;  %4118 = vmatmul.mubr.msk.f32.vlgmr.msra.gmra.mrb[20].mxu0 %vm396_vm2, %v2407_v45 }
0x124c   :  { %4121 = vmatpush3.xpose.msk.msra.mxu1 %vm396_vm2, %v2487_v33  ;;  %4122 = vmatprep.mubr.msk.f32.mxu1 %vm4756_vm1, %v4755_v36 }
0x124d   :  { %4130 = vmatprep.subr.mxu1 %v4755_v36  ;;  %4127 = vmatprep.mubr.msk.f32.mxu0 %vm4756_vm1, %v4755_v36 }
0x124f   :  { %4123 = vmatmul.mubr.msk.f32.vlgmr.msra.gmra.mrb[28].mxu1 %vm396_vm2, %v2485_v48 }
0x1250   :  { %4132 = vmatprep.mubr.msk.f32.mxu1 %vm4756_vm1, %v4755_v36 }
0x131a   :  { %v5408_v46 = vpop.f32.mrb[18].mxu0 }
0x131b   :  { %v4109_v47 = vpop.f32.mrb[19].mxu0 }
0x131e   :  { %v5410_v49 = vpop.f32.mrb[26].mxu1  ;;  %v2480_v39 = vpop.f32.mrb[20].mxu0 }
0x131f   :  { %v2562_v50 = vadd.f32 %v2480_v39, %v5368_v13  ;;  %v4114_v51 = vpop.f32.mrb[27].mxu1  ;;  %v4119_v52 = vpop.f32.mrb[21].mxu0 }
0x1321   :  { %v2564_v53 = vsel %vm396_vm2, %v2562_v50, -inf }
0x1322   :  { %2565 = vmax.xlane.f32.xlu0 %v2564_v53  ;;  %v2558_v54 = vpop.f32.mrb[28].mxu1 }
0x1323   :  { %v2563_v55 = vadd.f32 %v2558_v54, %v5371_v12  ;;  %v4124_v56 = vpop.f32.mrb[29].mxu1 }
0x1325   :  { %v2567_v57 = vsel %vm396_vm2, %v2563_v55, -inf }
0x1326   :  { %2568 = vmax.xlane.f32.xlu1 %v2567_v57 }
0x1337   :  { %2662 = vrot.lane.b32.xlu1 %v5346_v4, %s4759_s14 }
0x1338   :  { %2586 = vrot.lane.b32.xlu0 %v5348_v6, %s4759_s14 }
0x133b   :  { %2740 = vrot.lane.b32.xlu1 %v5348_v6, %s4763_s2 }
0x133f   :  { %2818 = vrot.lane.b32.xlu1 %v5346_v4, %s4763_s2 }
0x1343   :  { %2816 = vrot.lane.b32.xlu1 %v5361_v11, %s4763_s2 }
0x13af   :  { %v2566_v58 = vpop.xlane.xlu0 %2565 }
0x13b0   :  { %v2570_v41 = vsub.f32 %v2562_v50, %v2566_v58 }
0x13b2   :  { %v2572_v59 = vmul.f32 1.442695, %v2570_v41 }
0x13b3   :  { %v2587_v60 = vpop.permute.xlu0 %2586  ;;  %v2569_v61 = vpop.xlane.xlu1 %2568 }
0x13b4   :  { %4361 = vpow2.f32 %v2572_v59  ;;  %v2571_v62 = vsub.f32 %v2563_v55, %v2569_v61  ;;  %4126 = vmatpush3.msra.mxu0 %v2587_v60 }
0x13b5   :  { %4135 = vmatprep.subr.mxu0 %v4755_v36 }
0x13b6   :  { %v2574_v0 = vmul.f32 1.442695, %v2571_v62 }
0x13b7   :  { %v2663_v2 = vpop.permute.xlu1 %2662 }
0x13b8   :  { %4363 = vpow2.f32 %v2574_v0  ;;  %4131 = vmatpush3.msra.mxu1 %v2663_v2 }
0x13b9   :  { %4140 = vmatprep.subr.mxu1 %v4755_v36 }
0x13bb   :  { %v2741_v16 = vpop.permute.xlu1 %2740 }
0x13be   :  { %v4362_v3 = vpop.eup %4361 }
0x13bf   :  { %v2576_v5 = vsel %vm396_vm2, %v4362_v3, 0.0  ;;  %v2819_v20 = vpop.permute.xlu1 %2818 }
0x13c0   :  { %2577 = vadd.xlane.f32.xlu0 %v2576_v5 }
0x13c2   :  { %v4364_v7 = vpop.eup %4363 }
0x13c3   :  { %v2579_v8 = vsel %vm396_vm2, %v4364_v7, 0.0  ;;  %v2817_v23 = vpop.permute.xlu1 %2816 }
0x13c4   :  { %2580 = vadd.xlane.f32.xlu0 %v2579_v8 }
0x13da   :  { %2738 = vrot.lane.b32.xlu0 %v5353_v10, %s4763_s2 }
0x144d   :  { %v2578_v9 = vpop.xlane.xlu0 %2577 }
0x144e   :  { %4365 = vrcp.f32 %v2578_v9 }
0x1451   :  { %v2581_v15 = vpop.xlane.xlu0 %2580 }
0x1452   :  { %4367 = vrcp.f32 %v2581_v15 }
0x1455   :  { %v2739_v22 = vpop.permute.xlu0 %2738 }
0x1458   :  { %v4366_v17 = vpop.eup %4365 }
0x1459   :  { %v2583_v18 = vmul.f32 %v4366_v17, %v4362_v3 }
0x145b   :  { %4128 = vmatmul.mubr.msk.f32.vlgmr.msra.gmra.mrb[22].mxu0 %vm396_vm2, %v2583_v18 }
0x145c   :  { %v4368_v19 = vpop.eup %4367  ;;  %4136 = vmatpush3.xpose.msk.msra.mxu0 %vm396_vm2, %v2741_v16  ;;  %4137 = vmatprep.mubr.msk.f32.mxu0 %vm4756_vm1, %v4755_v36 }
0x145d   :  { %v2585_v21 = vmul.f32 %v4368_v19, %v4364_v7  ;;  %4145 = vmatprep.subr.mxu0 %v4755_v36 }
0x145f   :  { %4133 = vmatmul.mubr.msk.f32.vlgmr.msra.gmra.mrb[30].mxu1 %vm396_vm2, %v2585_v21  ;;  %4138 = vmatmul.mubr.msk.f32.vlgmr.msra.gmra.mrb[24].mxu0 %vm396_vm2, %v2739_v22 }
0x1460   :  { %4141 = vmatpush3.xpose.msk.msra.mxu1 %vm396_vm2, %v2819_v20  ;;  %4142 = vmatprep.mubr.msk.f32.mxu1 %vm4756_vm1, %v4755_v36 }
0x1461   :  { %4150 = vmatprep.subr.mxu1 %v4755_v36  ;;  %4147 = vmatprep.mubr.msk.f32.mxu0 %vm4756_vm1, %v4755_v36 }
0x1463   :  { %4143 = vmatmul.mubr.msk.f32.vlgmr.msra.gmra.mrb[32].mxu1 %vm396_vm2, %v2817_v23 }
0x1464   :  { %4152 = vmatprep.mubr.msk.f32.mxu1 %vm4756_vm1, %v4755_v36 }
0x152e   :  { %v5448_v24 = vpop.f32.mrb[22].mxu0 }
0x152f   :  { %v4129_v14 = vpop.f32.mrb[23].mxu0 }
0x1532   :  { %v5450_v25 = vpop.f32.mrb[30].mxu1  ;;  %v2812_v26 = vpop.f32.mrb[24].mxu0 }
0x1533   :  { %v2894_v27 = vadd.f32 %v2812_v26, %v5368_v13  ;;  %v4134_v28 = vpop.f32.mrb[31].mxu1  ;;  %v4139_v29 = vpop.f32.mrb[25].mxu0 }
0x1534   :  { %v2073_v28 = vld [vmem:[#allocation19] sm:$0xff]  ;;  %v2074_v29 = vld [vmem:[#allocation19 + $0x8] sm:$0xff] }
0x1535   :  { %v2896_v30 = vsel %vm396_vm2, %v2894_v27, -inf }
0x1536   :  { %2897 = vmax.xlane.f32.xlu0 %v2896_v30  ;;  %v2890_v31 = vpop.f32.mrb[32].mxu1  ;;  %v4248_v30 = vpack.c.bf16 %v2074_v29, %v2073_v28  ;;  %v3854_v29 = vld [vmem:[#allocation11 + $0x2] ss:$0 sm:$0xff] }
0x1537   :  { %v2895_v32 = vadd.f32 %v2890_v31, %v5371_v12  ;;  %v4144_v34 = vpop.f32.mrb[33].mxu1  ;;  %v2076_v31 = vld [vmem:[#allocation19 + $0x18] sm:$0xff] }
0x1539   :  { %v2899_v35 = vsel %vm396_vm2, %v2895_v32, -inf }
0x153a   :  { %2900 = vmax.xlane.f32.xlu1 %v2899_v35 }
0x154b   :  { %2994 = vrot.lane.b32.xlu1 %v5346_v4, %s4762_s24 }
0x154c   :  { %2918 = vrot.lane.b32.xlu0 %v5348_v6, %s4762_s24 }
0x154f   :  { %3072 = vrot.lane.b32.xlu1 %v5348_v6, %s4766_s25 }
0x1553   :  { %3150 = vrot.lane.b32.xlu1 %v5346_v4, %s4766_s25 }
0x1557   :  { %3148 = vrot.lane.b32.xlu1 %v5361_v11, %s4766_s25 }
0x15c3   :  { %v2898_v33 = vpop.xlane.xlu0 %2897 }
0x15c4   :  { %v2902_v37 = vsub.f32 %v2894_v27, %v2898_v33 }
0x15c6   :  { %v2904_v38 = vmul.f32 1.442695, %v2902_v37 }
0x15c7   :  { %v2919_v40 = vpop.permute.xlu0 %2918  ;;  %v2901_v44 = vpop.xlane.xlu1 %2900 }
0x15c8   :  { %4369 = vpow2.f32 %v2904_v38  ;;  %v2903_v42 = vsub.f32 %v2895_v32, %v2901_v44  ;;  %4146 = vmatpush3.msra.mxu0 %v2919_v40 }
0x15c9   :  { %4155 = vmatprep.subr.mxu0 %v4755_v36 }
0x15ca   :  { %v2906_v43 = vmul.f32 1.442695, %v2903_v42 }
0x15cb   :  { %v2995_v45 = vpop.permute.xlu1 %2994 }
0x15cc   :  { %4371 = vpow2.f32 %v2906_v43  ;;  %4151 = vmatpush3.msra.mxu1 %v2995_v45 }
0x15cd   :  { %4160 = vmatprep.subr.mxu1 %v4755_v36 }
0x15cf   :  { %v3073_v52 = vpop.permute.xlu1 %3072 }
0x15d2   :  { %v4370_v48 = vpop.eup %4369 }
0x15d3   :  { %v2908_v47 = vsel %vm396_vm2, %v4370_v48, 0.0  ;;  %v3151_v56 = vpop.permute.xlu1 %3150 }
0x15d4   :  { %2909 = vadd.xlane.f32.xlu0 %v2908_v47 }
0x15d6   :  { %v4372_v11 = vpop.eup %4371 }
0x15d7   :  { %v2911_v39 = vsel %vm396_vm2, %v4372_v11, 0.0  ;;  %v3149_v58 = vpop.permute.xlu1 %3148 }
0x15d8   :  { %2912 = vadd.xlane.f32.xlu0 %v2911_v39 }
0x15ee   :  { %3070 = vrot.lane.b32.xlu0 %v5353_v10, %s4766_s25 }
0x1661   :  { %v2910_v50 = vpop.xlane.xlu0 %2909 }
0x1662   :  { %4373 = vrcp.f32 %v2910_v50 }
0x1665   :  { %v2913_v51 = vpop.xlane.xlu0 %2912 }
0x1666   :  { %4375 = vrcp.f32 %v2913_v51 }
0x1669   :  { %v3071_v10 = vpop.permute.xlu0 %3070 }
0x166c   :  { %v4374_v53 = vpop.eup %4373 }
0x166d   :  { %v2915_v54 = vmul.f32 %v4374_v53, %v4370_v48 }
0x166f   :  { %4148 = vmatmul.mubr.msk.f32.vlgmr.msra.gmra.mrb[26].mxu0 %vm396_vm2, %v2915_v54 }
0x1670   :  { %v4376_v55 = vpop.eup %4375  ;;  %4156 = vmatpush3.xpose.msk.msra.mxu0 %vm396_vm2, %v3073_v52  ;;  %4157 = vmatprep.mubr.msk.f32.mxu0 %vm4756_vm1, %v4755_v36  ;;  %v3850_v52 = vld [vmem:[#allocation20] ss:$0 sm:$0xff] }
0x1671   :  { %v2917_v57 = vmul.f32 %v4376_v55, %v4372_v11  ;;  %4165 = vmatprep.subr.mxu0 %v4755_v36 }
0x1673   :  { %4153 = vmatmul.mubr.msk.f32.vlgmr.msra.gmra.mrb[34].mxu1 %vm396_vm2, %v2917_v57  ;;  %4158 = vmatmul.mubr.msk.f32.vlgmr.msra.gmra.mrb[28].mxu0 %vm396_vm2, %v3071_v10 }
0x1674   :  { %4161 = vmatpush3.xpose.msk.msra.mxu1 %vm396_vm2, %v3151_v56  ;;  %4162 = vmatprep.mubr.msk.f32.mxu1 %vm4756_vm1, %v4755_v36 }
0x1675   :  { %4170 = vmatprep.subr.mxu1 %v4755_v36  ;;  %4167 = vmatprep.mubr.msk.f32.mxu0 %vm4756_vm1, %v4755_v36 }
0x1677   :  { %4163 = vmatmul.mubr.msk.f32.vlgmr.msra.gmra.mrb[36].mxu1 %vm396_vm2, %v3149_v58 }
0x1678   :  { %4172 = vmatprep.mubr.msk.f32.mxu1 %vm4756_vm1, %v4755_v36 }
0x1742   :  { %v2990_v41 = vpop.f32.mrb[26].mxu0 }
0x1743   :  { %v4149_v59 = vpop.f32.mrb[27].mxu0 }
0x1746   :  { %v3066_v60 = vpop.f32.mrb[34].mxu1  ;;  %v3144_v61 = vpop.f32.mrb[28].mxu0 }
0x1747   :  { %v3226_v62 = vadd.f32 %v3144_v61, %v5368_v13  ;;  %v4154_v0 = vpop.f32.mrb[35].mxu1  ;;  %v4159_v2 = vpop.f32.mrb[29].mxu0 }
0x1749   :  { %v3228_v3 = vsel %vm396_vm2, %v3226_v62, -inf }
0x174a   :  { %3229 = vmax.xlane.f32.xlu0 %v3228_v3  ;;  %v3222_v5 = vpop.f32.mrb[36].mxu1 }
0x174b   :  { %v3227_v7 = vadd.f32 %v3222_v5, %v5371_v12  ;;  %v4164_v8 = vpop.f32.mrb[37].mxu1  ;;  %v3568_v5 = vld [vmem:[#allocation22 + $0x8] sm:$0xff] }
0x174c   :  { %v3569_v8 = vld [vmem:[#allocation22 + $0x10] sm:$0xff] }
0x174d   :  { %v3231_v9 = vsel %vm396_vm2, %v3227_v7, -inf }
0x174e   :  { %3232 = vmax.xlane.f32.xlu1 %v3231_v9  ;;  %v3570_v9 = vld [vmem:[#allocation22 + $0x18] sm:$0xff] }
0x175f   :  { %3326 = vrot.lane.b32.xlu1 %v5346_v4, %s4765_s29 }
0x1763   :  { %3404 = vrot.lane.b32.xlu1 %v5448_v24, %s4740_s21 }
0x1767   :  { %3406 = vrot.lane.b32.xlu1 %v5450_v25, %s4740_s21 }
0x176b   :  { %3414 = vrot.lane.b32.xlu1 %v3066_v60, %s4743_s22 }
0x17d7   :  { %v3230_v36 = vpop.xlane.xlu0 %3229 }
0x17d8   :  { %v3234_v13 = vsub.f32 %v3226_v62, %v3230_v36  ;;  %v4260_v36 = vpack.c.bf16 %v3570_v9, %v3569_v8 }
0x17da   :  { %v3236_v15 = vmul.f32 1.442695, %v3234_v13  ;;  %v3661_v13 = vld [vmem:[%s5588_s18] sm:$0xff] }
0x17db   :  { %v3233_v16 = vpop.xlane.xlu1 %3232 }
0x17dc   :  { %4377 = vpow2.f32 %v3236_v15  ;;  %v3235_v12 = vsub.f32 %v3227_v7, %v3233_v16  ;;  %v3662_v15 = vld [vmem:[%s5588_s18 + $0x8] sm:$0xff]  ;;  %v3663_v16 = vld [vmem:[%s5588_s18 + $0x10] sm:$0xff] }
0x17de   :  { %v3238_v17 = vmul.f32 1.442695, %v3235_v12  ;;  %v4264_v12 = vpack.c.bf16 %v3662_v15, %v3661_v13 }
0x17df   :  { %v3327_v18 = vpop.permute.xlu1 %3326 }
0x17e0   :  { %4379 = vpow2.f32 %v3238_v17  ;;  %4171 = vmatpush3.msra.mxu1 %v3327_v18  ;;  %v3664_v17 = vld [vmem:[%s5588_s18 + $0x18] sm:$0xff] }
0x17e1   :  { %v4268_v18 = vpack.c.bf16 %v3664_v17, %v3663_v16 }
0x17e3   :  { %v3405_v38 = vpop.permute.xlu1 %3404 }
0x17e4   :  { %v3426_v42 = vsel %vm396_vm2, %v5408_v46, %v3405_v38 }
0x17e6   :  { %v4378_v19 = vpop.eup %4377 }
0x17e7   :  { %v3240_v4 = vsel %vm396_vm2, %v4378_v19, 0.0  ;;  %v3407_v40 = vpop.permute.xlu1 %3406 }
0x17e8   :  { %3241 = vadd.xlane.f32.xlu0 %v3240_v4  ;;  %v3427_v11 = vsel %vm396_vm2, %v5410_v49, %v3407_v40  ;;  %v3666_v4 = vld [vmem:[%s5588_s18 + $0x28] sm:$0xff]  ;;  %v3855_v40 = vld [vmem:[#allocation23] ss:$0 sm:$0xff] }
0x17ea   :  { %v4380_v20 = vpop.eup %4379 }
0x17eb   :  { %v3243_v21 = vsel %vm396_vm2, %v4380_v20, 0.0  ;;  %v3415_v43 = vpop.permute.xlu1 %3414 }
0x17ec   :  { %3244 = vadd.xlane.f32.xlu0 %v3243_v21  ;;  %v3429_v39 = vsel %vm1746_vm4, %v3427_v11, %v3415_v43  ;;  %v3858_v11 = vld [vmem:[%s5609_s3] ss:$0 sm:$0xff] }
0x1802   :  { %3250 = vrot.lane.b32.xlu0 %v5348_v6, %s4765_s29  ;;  %v2075_v6 = vld [vmem:[#allocation19 + $0x10] sm:$0xff] }
0x1803   :  { %v4252_v32 = vpack.c.bf16 %v2076_v31, %v2075_v6 }
0x1806   :  { %3412 = vrot.lane.b32.xlu0 %v2990_v41, %s4743_s22 }
0x1875   :  { %v3242_v22 = vpop.xlane.xlu0 %3241 }
0x1876   :  { %4381 = vrcp.f32 %v3242_v22 }
0x1879   :  { %v3245_v23 = vpop.xlane.xlu0 %3244 }
0x187a   :  { %4383 = vrcp.f32 %v3245_v23 }
0x187d   :  { %v3251_v24 = vpop.permute.xlu0 %3250 }
0x187e   :  { %4166 = vmatpush3.msra.mxu0 %v3251_v24 }
0x187f   :  { %4249 = vmatprep.subr.bf16.mxu0 %v4248_v30 }
0x1880   :  { %v4382_v14 = vpop.eup %4381 }
0x1881   :  { %v3247_v25 = vmul.f32 %v4382_v14, %v4378_v19  ;;  %v3413_v44 = vpop.permute.xlu0 %3412  ;;  %v3665_v19 = vld [vmem:[%s5588_s18 + $0x20] sm:$0xff] }
0x1882   :  { %v3428_v45 = vsel %vm1746_vm4, %v3426_v42, %v3413_v44 }
0x1883   :  { %4168 = vmatmul.mubr.msk.f32.vlgmr.msra.gmra.mrb[30].mxu0 %vm396_vm2, %v3247_v25 }
0x1884   :  { %v4384_v26 = vpop.eup %4383  ;;  %4251 = vmatpush3.bf16.msra.mxu0 %v4248_v30 }
0x1885   :  { %v3249_v27 = vmul.f32 %v4384_v26, %v4380_v20  ;;  %4253 = vmatprep.subr.bf16.mxu0 %v4252_v32  ;;  %v4272_v20 = vpack.c.bf16 %v3666_v4, %v3665_v19 }
0x1887   :  { %4173 = vmatmul.mubr.msk.f32.vlgmr.msra.gmra.mrb[38].mxu1 %vm396_vm2, %v3249_v27  ;;  %v3853_v27 = vld [vmem:[#allocation10 + $0x2] ss:$0 sm:$0xff] }
0x1888   :  { %4255 = vmatpush3.bf16.msra.mxu0 %v4252_v32 }
0x1889   :  { %4265 = vmatprep.subr.bf16.mxu0 %v4264_v12 }
0x1956   :  { %v3322_v34 = vpop.f32.mrb[30].mxu0 }
0x1957   :  { %3420 = vrot.lane.b32.xlu0 %v3322_v34, %s4768_s7  ;;  %v4169_v35 = vpop.f32.mrb[31].mxu0 }
0x195a   :  { %v3398_v33 = vpop.f32.mrb[38].mxu1 }
0x195b   :  { %3422 = vrot.lane.b32.xlu1 %v3398_v33, %s4768_s7  ;;  %v4174_v37 = vpop.f32.mrb[39].mxu1  ;;  %v3667_v33 = vld [vmem:[%s5588_s18 + $0x30] sm:$0xff] }
0x195c   :  { %v3668_v37 = vld [vmem:[%s5588_s18 + $0x38] sm:$0xff]  ;;  %s4769_s18 = smov [#allocation25]  }
0x195d   :  { %v4276_v38 = vpack.c.bf16 %v3668_v37, %v3667_v33  ;;  %s3767_s26 = sshll.u32 %s4769_s18, 4  ;;  %s3768_s26 = int_to_ptr.vmem [resolvable:$true] %s3767_s26 }
0x195e   :  { %s4697_s11 = scalar_lea.vmem %s3768_s26, 256  ;;  %p4702_p1 = scmp.lt.s32.totalorder %s3768_s26, %s3768_s26 }
0x195f   :  { %p4698_p0 = scmp.ne.s32.totalorder %s3768_s26, %s4697_s11  ;;  %p4703_p2 = scmp.lt.s32.totalorder %s4697_s11, %s4697_s11 }
0x1961   :  { %p4704_p3 = por %p4703_p2, %p4702_p1 }
0x1963   :  { %p4705_p4 = pnand %p4704_p3, %p4698_p0 }
0x19c9   :  { %v3421_v48 = vpop.permute.xlu0 %3420 }
0x19ca   :  { %v3430_v47 = vsel %vm1749_vm3, %v3428_v45, %v3421_v48 }
0x19cb   :  { %4183 = vmatprep.mubr.msk.f32.mxu0 %vm248_vm0, %v3430_v47 }
0x19cd   :  { %v3423_v50 = vpop.permute.xlu1 %3422 }
0x19ce   :  { %v3431_v51 = vsel %vm1749_vm3, %v3429_v39, %v3423_v50 }
0x19cf   :  { %4184 = vmatmul.mubr.msk.f32.vlgmr.msra.gmra.mrb[32].mxu0 %vm248_vm0, %v3431_v51 }
0x19d0   :  { %4267 = vmatpush3.bf16.msra.mxu0 %v4264_v12 }
0x19d1   :  { %4269 = vmatprep.subr.bf16.mxu0 %v4268_v18 }
0x19d4   :  { %4271 = vmatpush3.bf16.msra.mxu0 %v4268_v18 }
0x19d5   :  { %4273 = vmatprep.subr.bf16.mxu0 %v4272_v20 }
0x19d8   :  { %4275 = vmatpush3.bf16.msra.mxu0 %v4272_v20 }
0x19d9   :  { %4277 = vmatprep.subr.bf16.mxu0 %v4276_v38 }
0x19dc   :  { %4279 = vmatpush3.bf16.msra.mxu0 %v4276_v38 }
0x1aa2   :  { %v4185_v46 = vpop.f32.mrb[32].mxu0 }
0x1aa3   :  { %v3516_v53 = vadd.f32 %v4185_v46, %v3850_v52  ;;  %v3510_v54 = vpop.f32.mrb[33].mxu0 }
0x1aa4   :  { %v3511_v55 = vadd.f32 %v3850_v52, %v3510_v54 }
0x1aa5   :  { %v3520_v56 = vadd.f32 %v3516_v53, %v5340_v1 }
0x1aa6   :  { %v3519_v57 = vadd.f32 %v3511_v55, %v5336_v63  ;;  %v3567_v63 = vld [vmem:[#allocation22] sm:$0xff] }
0x1aa7   :  { %v3524_v10 = vsel %vm248_vm0, %v3520_v56, 0.0  ;;  %v4256_v7 = vpack.c.bf16 %v3568_v5, %v3567_v63 }
0x1aa8   :  { %3525 = vadd.xlane.f32.xlu1 %v3524_v10  ;;  %v3521_v49 = vsel %vm248_vm0, %v3519_v57, 0.0 }
0x1aa9   :  { %3522 = vadd.xlane.f32.xlu0 %v3521_v49  ;;  %4257 = vmatprep.subr.bf16.mxu1 %v4256_v7 }
0x1aaa   :  { %4259 = vmatpush3.bf16.msra.mxu1 %v4256_v7 }
0x1aab   :  { %4261 = vmatprep.subr.bf16.mxu1 %v4260_v36 }
0x1aae   :  { %4263 = vmatpush3.bf16.msra.mxu1 %v4260_v36 }
0x1b35   :  { %v3526_v58 = vpop.xlane.xlu1 %3525 }
0x1b36   :  { %v3528_v41 = vmul.f32 0.03125, %v3526_v58  ;;  %v3523_v59 = vpop.xlane.xlu0 %3522 }
0x1b37   :  { %v3527_v60 = vmul.f32 0.03125, %v3523_v59 }
0x1b38   :  { %v3530_v61 = vsub.f32 %v3520_v56, %v3528_v41 }
0x1b39   :  { %v3529_v62 = vsub.f32 %v3519_v57, %v3527_v60 }
0x1b3a   :  { %v3532_v3 = vmul.f32 %v3530_v61, %v3530_v61 }
0x1b3b   :  { %v3531_v0 = vmul.f32 %v3529_v62, %v3529_v62 }
0x1b3c   :  { %v3536_v1 = vsel %vm248_vm0, %v3532_v3, 0.0 }
0x1b3d   :  { %v3533_v2 = vsel %vm248_vm0, %v3531_v0, 0.0 }
0x1b3e   :  { %3534 = vadd.xlane.f32.xlu0 %v3533_v2 }
0x1b42   :  { %3537 = vadd.xlane.f32.xlu0 %v3536_v1 }
0x1bcb   :  { %v3535_v21 = vpop.xlane.xlu0 %3534 }
0x1bcc   :  { %v3539_v22 = vmul.f32 0.03125, %v3535_v21 }
0x1bce   :  { %v3541_v23 = vadd.f32 1e-05, %v3539_v22 }
0x1bcf   :  { %v3538_v24 = vpop.xlane.xlu0 %3537 }
0x1bd0   :  { %4385 = vrsqrt.f32 %v3541_v23  ;;  %v3540_v14 = vmul.f32 0.03125, %v3538_v24 }
0x1bd2   :  { %v3542_v25 = vadd.f32 1e-05, %v3540_v14 }
0x1bd4   :  { %4387 = vrsqrt.f32 %v3542_v25 }
0x1bda   :  { %v4386_v26 = vpop.eup %4385 }
0x1bdb   :  { %v3545_v28 = vmul.f32 %v4386_v26, %v3529_v62 }
0x1bdd   :  { %v3555_v30 = vmul.f32 %v3853_v27, %v3545_v28 }
0x1bde   :  { %v4388_v6 = vpop.eup %4387 }
0x1bdf   :  { %v3546_v31 = vmul.f32 %v4388_v6, %v3530_v61  ;;  %v3565_v32 = vadd.f32 %v3854_v29, %v3555_v30 }
0x1be1   :  { %v3556_v34 = vmul.f32 %v3853_v27, %v3546_v31  ;;  %4194 = vmatprep.mubr.msk.f32.mxu1 %vm248_vm0, %v3565_v32 }
0x1be3   :  { %v3566_v35 = vadd.f32 %v3854_v29, %v3556_v34 }
0x1be5   :  { %4195 = vmatmul.mubr.msk.f32.vlgmr.msra.gmra.mrb[40].mxu1 %vm248_vm0, %v3566_v35 }
0x1cb8   :  { %v4196_v44 = vpop.f32.mrb[40].mxu1 }
0x1cb9   :  { %v3656_v42 = vadd.f32 %v4196_v44, %v3855_v40  ;;  %v3650_v43 = vpop.f32.mrb[41].mxu1 }
0x1cba   :  { %v3651_v45 = vadd.f32 %v3855_v40, %v3650_v43 }
0x1cbb   :  { %v3660_v47 = vmax.f32 %v3656_v42, 0.0 }
0x1cbc   :  { %v3659_v48 = vmax.f32 %v3651_v45, 0.0 }
0x1cbe   :  { %4213 = vmatprep.mubr.msk.f32.mxu0 %vm3676_vm5, %v3659_v48 }
0x1cbf   :  { %4214 = vmatmul.mubr.msk.f32.vlgmr.msra.gmra.mrb[34].mxu0 %vm3676_vm5, %v3660_v47 }
0x1d92   :  { %v4215_v39 = vpop.f32.mrb[34].mxu0 }
0x1d93   :  { %v3755_v50 = vadd.f32 %v4215_v39, %v3858_v11  ;;  %v3749_v51 = vpop.f32.mrb[35].mxu0 }
0x1d94   :  { %v3750_v52 = vadd.f32 %v3858_v11, %v3749_v51 }
0x1d95   :  { %v3759_v46 = vadd.f32 %v3755_v50, %v3566_v35 }
0x1d96   :  { %v3758_v53 = vadd.f32 %v3750_v52, %v3565_v32 }
0x1d97   :  { %3761 = vst.msk [vmem:[#allocation25 + $0x8] sm:$0xff] %vm248_vm0, %v3759_v46 }
0x1d98   :  { %3760 = vst.msk [vmem:[#allocation25] sm:$0xff] %vm248_vm0, %v3758_v53 }
0x1d99   :  { %4708 = shalt.err (!%p4705_p4)
}
0x1d9a   :  { %s5610_s15 = sld [smem:[#allocation41_spill]] }
0x1da0   :  { %s4709_s16 = scalar_lea.hbm %s5610_s15, 256 }
0x1da1   :  { %p4710_p5 = scmp.ne.s32.totalorder %s5610_s15, %s4709_s16  ;;  %p4713_p6 = scmp.lt.u32.totalorder %s4709_s16, %s5610_s15 }
0x1da3   :  { %p4715_p7 = pnand %p4713_p6, %p4710_p5 }
0x1da5   :  { %4718 = shalt.err (!%p4715_p7)
}
0x1da6   :  { %3773 = dma.vmem_to_hbm [thread:$0]  %s3768_s26, 256, %s5610_s15, [#allocation4], %s4739_s0, %s4739_s0, %s4740_s21  }
0x1da7   :  { %4735 = dma.done.wait [#allocation4], 256  }
0x1da8   :  { %4736 = vsyncadd [#allocation4], 4294967040 }
0x1da9   :  { %3777 = vsyncpa [#allocation3], 1 }
0x1daa   :  { %3778 = vsyncpa [#allocation6], 1 }
0x1dab   :  { %3779 = vsyncpa [#allocation9], 1 }
0x1dac   :  { %3780 = vsyncpa [#allocation12], 1 }
0x1dad   :  { %3781 = vsyncpa [#allocation15], 1 }
0x1dae   :  { %3782 = vsyncpa [#allocation18], 1 }
0x1daf   :  { %3783 = vsyncpa [#allocation21], 1 }
0x1db0   :  { %3784 = vsyncpa [#allocation24], 1 }
0x1db1   :  { %3785 = vsyncpa [#allocation4], 1 }

</bundles_post_ra>
